<compile_context>
chip_gen: v7x
topology: tpu7x:2x2x1
jax: 0.10.0
libtpu: 0.0.40
codegen_flags: <defaults>
</compile_context>

<pallas_src>
import math
import functools

import jax
import jax.numpy as jnp
from jax.experimental import pallas as pl
from jax.experimental.pallas import tpu as pltpu


# ----------------------------- Pallas kernels -----------------------------

def _embed_scale_pos_kernel(tok_ref, pos_ref, o_ref, *, scale):
    # out = token_embed * sqrt(d_model) + positional_encoding
    o_ref[...] = tok_ref[...] * scale + pos_ref[...]


def embed_scale_pos(tok, pos):
    B, S, D = tok.shape
    return pl.pallas_call(
        functools.partial(_embed_scale_pos_kernel, scale=float(math.sqrt(D))),
        out_shape=jax.ShapeDtypeStruct((B, S, D), jnp.float32),
        grid=(B,),
        in_specs=[pl.BlockSpec((None, S, D), lambda b: (b, 0, 0)),
                  pl.BlockSpec((S, D), lambda b: (0, 0))],
        out_specs=pl.BlockSpec((None, S, D), lambda b: (b, 0, 0)),
        compiler_params=pltpu.CompilerParams(dimension_semantics=("parallel",)),
    )(tok, pos)


def _self_attn_block_kernel(x_ref, m_ref, wqkv_ref, bqkv_ref, wo_ref, bo_ref,
                            g_ref, beta_ref, o_ref, *, n_heads, eps):
    x = x_ref[...]                                   # (S, D) f32
    S, D = x.shape
    dk = D // n_heads
    scale = 1.0 / math.sqrt(dk)

    # Fused QKV projection: a single (D, 3D) bf16 matmul, f32 accumulation.
    qkv = jnp.dot(x.astype(jnp.bfloat16), wqkv_ref[...],
                  preferred_element_type=jnp.float32) + bqkv_ref[...]      # (S, 3D)
    add_mask = m_ref[...]                            # (S, S) additive mask
    wo = wo_ref[...]                                 # (D, D) f32

    # All heads handled inside one kernel invocation.  The output projection is
    # folded into the per-head accumulation (attn @ Wo == sum_h o_h @ Wo_h),
    # avoiding any in-kernel head concat / transpose.
    y = jnp.zeros((S, D), jnp.float32)
    for hh in range(n_heads):
        qh = qkv[:, hh * dk:(hh + 1) * dk].astype(jnp.bfloat16)
        kh = qkv[:, D + hh * dk:D + (hh + 1) * dk].astype(jnp.bfloat16)
        vh = qkv[:, 2 * D + hh * dk:2 * D + (hh + 1) * dk].astype(jnp.bfloat16)
        s = jnp.einsum("qd,kd->qk", qh, kh,
                       preferred_element_type=jnp.float32) * scale + add_mask
        mx = jnp.max(s, axis=-1, keepdims=True)
        p = jnp.exp(s - mx)
        inv = pl.reciprocal(jnp.sum(p, axis=-1, keepdims=True), approx=True)
        oh = jnp.dot((p * inv).astype(jnp.bfloat16), vh,
                     preferred_element_type=jnp.float32)                   # (S, dk)
        y = y + jnp.dot(oh.astype(jnp.bfloat16),
                        wo[hh * dk:(hh + 1) * dk, :].astype(jnp.bfloat16),
                        preferred_element_type=jnp.float32)
    y = y + bo_ref[...]

    # Residual + LayerNorm (post-norm), f32 math.
    r = y + x
    mean = jnp.mean(r, axis=-1, keepdims=True)
    var = jnp.mean((r - mean) ** 2, axis=-1, keepdims=True)
    norm = (r - mean) * jax.lax.rsqrt(var + eps)
    o_ref[...] = norm * g_ref[...] + beta_ref[...]


def self_attn_block(x, add_mask, wqkv, bqkv, wo, bo, gamma, beta, n_heads, eps=1e-5):
    B, S, D = x.shape
    return pl.pallas_call(
        functools.partial(_self_attn_block_kernel, n_heads=n_heads, eps=eps),
        out_shape=jax.ShapeDtypeStruct((B, S, D), jnp.float32),
        grid=(B,),
        in_specs=[pl.BlockSpec((None, S, D), lambda b: (b, 0, 0)),
                  pl.BlockSpec((None, S, S), lambda b: (b, 0, 0)),
                  pl.BlockSpec((D, 3 * D), lambda b: (0, 0)),
                  pl.BlockSpec((1, 3 * D), lambda b: (0, 0)),
                  pl.BlockSpec((D, D), lambda b: (0, 0)),
                  pl.BlockSpec((1, D), lambda b: (0, 0)),
                  pl.BlockSpec((1, D), lambda b: (0, 0)),
                  pl.BlockSpec((1, D), lambda b: (0, 0))],
        out_specs=pl.BlockSpec((None, S, D), lambda b: (b, 0, 0)),
        compiler_params=pltpu.CompilerParams(dimension_semantics=("parallel",)),
    )(x, add_mask, wqkv, bqkv.reshape(1, 3 * D), wo, bo.reshape(1, D),
      gamma.reshape(1, D), beta.reshape(1, D))


def _cross_attn_block_kernel(x_ref, enc_ref, wq_ref, bq_ref, wkv_ref, bkv_ref,
                             wo_ref, bo_ref, g_ref, beta_ref, o_ref,
                             *, n_heads, eps):
    x = x_ref[...]                                   # (S, D)
    enc = enc_ref[...]                               # (Se, D)
    S, D = x.shape
    dk = D // n_heads
    scale = 1.0 / math.sqrt(dk)

    q = jnp.dot(x.astype(jnp.bfloat16), wq_ref[...],
                preferred_element_type=jnp.float32) + bq_ref[...]          # (S, D)
    kv = jnp.dot(enc.astype(jnp.bfloat16), wkv_ref[...],
                 preferred_element_type=jnp.float32) + bkv_ref[...]        # (Se, 2D)
    wo = wo_ref[...]

    y = jnp.zeros((S, D), jnp.float32)
    for hh in range(n_heads):
        qh = q[:, hh * dk:(hh + 1) * dk].astype(jnp.bfloat16)
        kh = kv[:, hh * dk:(hh + 1) * dk].astype(jnp.bfloat16)
        vh = kv[:, D + hh * dk:D + (hh + 1) * dk].astype(jnp.bfloat16)
        # no mask over the encoder sequence (the all-zero additive mask is omitted)
        s = jnp.einsum("qd,kd->qk", qh, kh,
                       preferred_element_type=jnp.float32) * scale
        mx = jnp.max(s, axis=-1, keepdims=True)
        p = jnp.exp(s - mx)
        inv = pl.reciprocal(jnp.sum(p, axis=-1, keepdims=True), approx=True)
        oh = jnp.dot((p * inv).astype(jnp.bfloat16), vh,
                     preferred_element_type=jnp.float32)
        y = y + jnp.dot(oh.astype(jnp.bfloat16),
                        wo[hh * dk:(hh + 1) * dk, :].astype(jnp.bfloat16),
                        preferred_element_type=jnp.float32)
    y = y + bo_ref[...]

    r = y + x
    mean = jnp.mean(r, axis=-1, keepdims=True)
    var = jnp.mean((r - mean) ** 2, axis=-1, keepdims=True)
    norm = (r - mean) * jax.lax.rsqrt(var + eps)
    o_ref[...] = norm * g_ref[...] + beta_ref[...]


def cross_attn_block(x, enc, wq, bq, wkv, bkv, wo, bo, gamma, beta,
                     n_heads, eps=1e-5):
    B, S, D = x.shape
    Se = enc.shape[1]
    return pl.pallas_call(
        functools.partial(_cross_attn_block_kernel, n_heads=n_heads, eps=eps),
        out_shape=jax.ShapeDtypeStruct((B, S, D), jnp.float32),
        grid=(B,),
        in_specs=[pl.BlockSpec((None, S, D), lambda b: (b, 0, 0)),
                  pl.BlockSpec((None, Se, D), lambda b: (b, 0, 0)),
                  pl.BlockSpec((D, D), lambda b: (0, 0)),
                  pl.BlockSpec((1, D), lambda b: (0, 0)),
                  pl.BlockSpec((D, 2 * D), lambda b: (0, 0)),
                  pl.BlockSpec((1, 2 * D), lambda b: (0, 0)),
                  pl.BlockSpec((D, D), lambda b: (0, 0)),
                  pl.BlockSpec((1, D), lambda b: (0, 0)),
                  pl.BlockSpec((1, D), lambda b: (0, 0)),
                  pl.BlockSpec((1, D), lambda b: (0, 0))],
        out_specs=pl.BlockSpec((None, S, D), lambda b: (b, 0, 0)),
        compiler_params=pltpu.CompilerParams(dimension_semantics=("parallel",)),
    )(x, enc, wq, bq.reshape(1, D), wkv, bkv.reshape(1, 2 * D), wo,
      bo.reshape(1, D), gamma.reshape(1, D), beta.reshape(1, D))


def _ffn_block_kernel(x_ref, w1_ref, b1_ref, w2_ref, b2_ref, g_ref, beta_ref,
                      o_ref, *, eps):
    x = x_ref[...]                                   # (R, D) f32, R = B*S
    hdn = jnp.dot(x.astype(jnp.bfloat16), w1_ref[...],
                  preferred_element_type=jnp.float32) + b1_ref[...]
    hdn = jnp.maximum(hdn, 0.0)                      # ReLU
    y = jnp.dot(hdn.astype(jnp.bfloat16), w2_ref[...],
                preferred_element_type=jnp.float32) + b2_ref[...]
    r = y + x                                        # residual
    mean = jnp.mean(r, axis=-1, keepdims=True)
    var = jnp.mean((r - mean) ** 2, axis=-1, keepdims=True)
    norm = (r - mean) * jax.lax.rsqrt(var + eps)
    o_ref[...] = norm * g_ref[...] + beta_ref[...]


def ffn_block(x2d, w1, b1, w2, b2, gamma, beta, eps=1e-5):
    # Batch folded into the row axis: one gridless launch over (B*S, D).
    R, D = x2d.shape
    Dff = w1.shape[1]
    return pl.pallas_call(
        functools.partial(_ffn_block_kernel, eps=eps),
        out_shape=jax.ShapeDtypeStruct((R, D), jnp.float32),
    )(x2d, w1, b1.reshape(1, Dff), w2, b2.reshape(1, D),
      gamma.reshape(1, D), beta.reshape(1, D))


# ----------------------------- JAX glue -----------------------------------

def sinusoidal_pos(seq_len, d_model):
    pos = jnp.arange(seq_len, dtype=jnp.float32)[:, None]
    i = jnp.arange(d_model // 2, dtype=jnp.float32)[None, :]
    angle = pos / jnp.power(10000.0, 2.0 * i / d_model)
    pe = jnp.zeros((seq_len, d_model), jnp.float32)
    pe = pe.at[:, 0::2].set(jnp.sin(angle))
    pe = pe.at[:, 1::2].set(jnp.cos(angle))
    return pe


def init_params(key, vocab_size, seq_length, d_model, h, N):
    d_ff = 4 * d_model

    def dense(k, din, dout, dtype=jnp.float32):
        w = jax.random.normal(k, (din, dout), jnp.float32) * 0.02
        return w.astype(dtype), jnp.zeros((dout,), jnp.float32)

    keys = iter(jax.random.split(key, 1 + 8 * N))
    params = {
        "embed": jax.random.normal(next(keys), (vocab_size, d_model),
                                   jnp.float32) * 0.02,
        "pos": sinusoidal_pos(seq_length, d_model),
        "layers": [],
    }
    for _ in range(N):
        lp = {}
        # Fused self-attention QKV weight (D, 3D); big matmul weights kept in bf16
        # (halves weight DMA bytes, bf16 MXU inputs).  Wo stays f32 because it is
        # sliced per head inside the kernel.
        lp["self_wqkv"], lp["self_bqkv"] = dense(next(keys), d_model, 3 * d_model,
                                                 jnp.bfloat16)
        lp["self_wo"], lp["self_bo"] = dense(next(keys), d_model, d_model)
        lp["cross_wq"], lp["cross_bq"] = dense(next(keys), d_model, d_model,
                                               jnp.bfloat16)
        lp["cross_wkv"], lp["cross_bkv"] = dense(next(keys), d_model, 2 * d_model,
                                                 jnp.bfloat16)
        lp["cross_wo"], lp["cross_bo"] = dense(next(keys), d_model, d_model)
        lp["ffn_w1"], lp["ffn_b1"] = dense(next(keys), d_model, d_ff, jnp.bfloat16)
        lp["ffn_w2"], lp["ffn_b2"] = dense(next(keys), d_ff, d_model, jnp.bfloat16)
        for ln in ["ln1", "ln2", "ln3"]:
            lp[ln] = (jnp.ones((d_model,), jnp.float32),
                      jnp.zeros((d_model,), jnp.float32))
        params["layers"].append(lp)
    return params


def decoder_forward(params, target_seq, mask_dec, output_enc, h):
    # embedding gather (plain-JAX glue) + scale & positional add (Pallas kernel)
    tok = params["embed"][target_seq]                # (B, S, D)
    x = embed_scale_pos(tok, params["pos"])
    # TODO(synk): dropout is identity here (eval / inference semantics, p has no effect)

    B, S, D = x.shape
    # mask_dec: (B, S, S) with 1 = attend, 0 = masked  ->  additive mask.
    # (Kept as a runtime input for module fidelity; the all-zero cross mask is omitted.)
    self_add_mask = (1.0 - mask_dec.astype(jnp.float32)) * -1e9

    for lp in params["layers"]:
        # --- masked multi-head self-attention + out-proj + residual + LN (1 kernel) ---
        x = self_attn_block(x, self_add_mask,
                            lp["self_wqkv"], lp["self_bqkv"],
                            lp["self_wo"], lp["self_bo"], *lp["ln1"], h)
        # --- cross-attention with encoder output + residual + LN (1 kernel) ---
        x = cross_attn_block(x, output_enc,
                             lp["cross_wq"], lp["cross_bq"],
                             lp["cross_wkv"], lp["cross_bkv"],
                             lp["cross_wo"], lp["cross_bo"], *lp["ln2"], h)
        # --- position-wise feed-forward + residual + LN (1 kernel, rows = B*S) ---
        x = ffn_block(x.reshape(B * S, D),
                      lp["ffn_w1"], lp["ffn_b1"],
                      lp["ffn_w2"], lp["ffn_b2"], *lp["ln3"]).reshape(B, S, D)
    return x


# ----------------------------- main ----------------------------------------

if __name__ == "__main__":
    vocab_size, seq_length, d_model, h, N, dropout = 50, 8, 32, 4, 2, 0.0
    B = 2

    key = jax.random.PRNGKey(0)
    k_tok, k_enc, k_par = jax.random.split(key, 3)

    target_seq = jax.random.randint(k_tok, (B, seq_length), 0, vocab_size)
    output_enc = jax.random.normal(k_enc, (B, seq_length, d_model), jnp.float32)
    causal = jnp.tril(jnp.ones((seq_length, seq_length), jnp.float32))
    mask_dec = jnp.broadcast_to(causal, (B, seq_length, seq_length))

    params = init_params(k_par, vocab_size, seq_length, d_model, h, N)

    fwd = jax.jit(lambda p, t, m, e: decoder_forward(p, t, m, e, h))
    out = fwd(params, target_seq, mask_dec, output_enc)
    out = jax.block_until_ready(out)

    assert out.shape == (B, seq_length, d_model)
    assert jnp.all(jnp.isfinite(out))
    print("KERNEL_OK")
</pallas_src>

<mosaic_0001>
module attributes {stable_mosaic.version = 11 : i64} {
  func.func @_embed_scale_pos_kernel(%arg0: i32, %arg1: memref<1x8x32xf32, #tpu.memory_space<vmem>>, %arg2: memref<8x32xf32, #tpu.memory_space<vmem>>, %arg3: memref<1x8x32xf32, #tpu.memory_space<vmem>>) attributes {dimension_semantics = [#tpu.dimension_semantics<parallel>], iteration_bounds = array<i64: 2>, scalar_prefetch = 0 : i64, scratch_operands = 0 : i64, tpu.core_type = #tpu.core_type<tc>, window_params = [{transform_indices = @transform_0, window_bounds = array<i64: 1, 8, 32>}, {pipeline_mode = #tpu.pipeline_mode<synchronous>, transform_indices = @transform_1, window_bounds = array<i64: 8, 32>}, {transform_indices = @transform_2, window_bounds = array<i64: 1, 8, 32>}]} {
    %c0 = arith.constant 0 : index
    %c0_0 = arith.constant 0 : index
    %c0_1 = arith.constant 0 : index
    %0 = vector.load %arg1[%c0, %c0_0, %c0_1] : memref<1x8x32xf32, #tpu.memory_space<vmem>>, vector<1x8x32xf32>
    %1 = vector.shape_cast %0 : vector<1x8x32xf32> to vector<8x32xf32>
    %cst = arith.constant 5.65685415 : f32
    %2 = vector.broadcast %cst : f32 to vector<8x32xf32>
    %3 = arith.mulf %1, %2 : vector<8x32xf32>
    %c0_2 = arith.constant 0 : index
    %c0_3 = arith.constant 0 : index
    %4 = vector.load %arg2[%c0_2, %c0_3] : memref<8x32xf32, #tpu.memory_space<vmem>>, vector<8x32xf32>
    %5 = arith.addf %3, %4 : vector<8x32xf32>
    %c0_4 = arith.constant 0 : index
    %c0_5 = arith.constant 0 : index
    %c0_6 = arith.constant 0 : index
    %6 = vector.load %arg3[%c0_4, %c0_5, %c0_6] : memref<1x8x32xf32, #tpu.memory_space<vmem>>, vector<1x8x32xf32>
    %7 = vector.shape_cast %6 : vector<1x8x32xf32> to vector<8x32xf32>
    %8 = vector.shape_cast %5 : vector<8x32xf32> to vector<1x8x32xf32>
    tpu.vector_store %arg3[%c0_4, %c0_5, %c0_6], %8 {strides = array<i32>} : memref<1x8x32xf32, #tpu.memory_space<vmem>>, vector<1x8x32xf32>,
    return
  }
  func.func @transform_0(%arg0: i32) -> (i32, i32, i32) {
    %c0_i32 = arith.constant 0 : i32
    %c0_i32_0 = arith.constant 0 : i32
    %c0_i32_1 = arith.constant 0 : i32
    return %arg0, %c0_i32, %c0_i32_0 : i32, i32, i32
  }
  func.func @transform_1(%arg0: i32) -> (i32, i32) {
    %c0_i32 = arith.constant 0 : i32
    %c0_i32_0 = arith.constant 0 : i32
    %c0_i32_1 = arith.constant 0 : i32
    return %c0_i32, %c0_i32_0 : i32, i32
  }
  func.func @transform_2(%arg0: i32) -> (i32, i32, i32) {
    %c0_i32 = arith.constant 0 : i32
    %c0_i32_0 = arith.constant 0 : i32
    %c0_i32_1 = arith.constant 0 : i32
    return %arg0, %c0_i32, %c0_i32_0 : i32, i32, i32
  }
}

module attributes {stable_mosaic.version = 11 : i64} {
  func.func @_self_attn_block_kernel(%arg0: i32, %arg1: memref<1x8x32xf32, #tpu.memory_space<vmem>>, %arg2: memref<1x8x8xf32, #tpu.memory_space<vmem>>, %arg3: memref<32x96xbf16, #tpu.memory_space<vmem>>, %arg4: memref<1x96xf32, #tpu.memory_space<vmem>>, %arg5: memref<32x32xf32, #tpu.memory_space<vmem>>, %arg6: memref<1x32xf32, #tpu.memory_space<vmem>>, %arg7: memref<1x32xf32, #tpu.memory_space<vmem>>, %arg8: memref<1x32xf32, #tpu.memory_space<vmem>>, %arg9: memref<1x8x32xf32, #tpu.memory_space<vmem>>) attributes {dimension_semantics = [#tpu.dimension_semantics<parallel>], iteration_bounds = array<i64: 2>, scalar_prefetch = 0 : i64, scratch_operands = 0 : i64, tpu.core_type = #tpu.core_type<tc>, window_params = [{transform_indices = @transform_0, window_bounds = array<i64: 1, 8, 32>}, {transform_indices = @transform_1, window_bounds = array<i64: 1, 8, 8>}, {pipeline_mode = #tpu.pipeline_mode<synchronous>, transform_indices = @transform_2, window_bounds = array<i64: 32, 96>}, {pipeline_mode = #tpu.pipeline_mode<synchronous>, transform_indices = @transform_3, window_bounds = array<i64: 1, 96>}, {pipeline_mode = #tpu.pipeline_mode<synchronous>, transform_indices = @transform_4, window_bounds = array<i64: 32, 32>}, {pipeline_mode = #tpu.pipeline_mode<synchronous>, transform_indices = @transform_5, window_bounds = array<i64: 1, 32>}, {pipeline_mode = #tpu.pipeline_mode<synchronous>, transform_indices = @transform_6, window_bounds = array<i64: 1, 32>}, {pipeline_mode = #tpu.pipeline_mode<synchronous>, transform_indices = @transform_7, window_bounds = array<i64: 1, 32>}, {transform_indices = @transform_8, window_bounds = array<i64: 1, 8, 32>}]} {
    %c0 = arith.constant 0 : index
    %c0_0 = arith.constant 0 : index
    %c0_1 = arith.constant 0 : index
    %0 = vector.load %arg1[%c0, %c0_0, %c0_1] : memref<1x8x32xf32, #tpu.memory_space<vmem>>, vector<1x8x32xf32>
    %1 = vector.shape_cast %0 : vector<1x8x32xf32> to vector<8x32xf32>
    %2 = arith.truncf %1 : vector<8x32xf32> to vector<8x32xbf16>
    %c0_2 = arith.constant 0 : index
    %c0_3 = arith.constant 0 : index
    %3 = vector.load %arg3[%c0_2, %c0_3] : memref<32x96xbf16, #tpu.memory_space<vmem>>, vector<32x96xbf16>
    %cst = arith.constant dense<0.000000e+00> : vector<8x96xf32>
    %4 = tpu.matmul %2, %3, %cst {dimension_numbers = #tpu.dot_dimension_numbers<[1], [0], [0], [1], [0, 0, 1, 1], [], []>} : vector<8x32xbf16>, vector<32x96xbf16>, vector<8x96xf32> -> vector<8x96xf32>
    %c0_4 = arith.constant 0 : index
    %c0_5 = arith.constant 0 : index
    %5 = vector.load %arg4[%c0_4, %c0_5] : memref<1x96xf32, #tpu.memory_space<vmem>>, vector<1x96xf32>
    %6 = vector.broadcast %5 : vector<1x96xf32> to vector<8x96xf32>
    %7 = arith.addf %4, %6 : vector<8x96xf32>
    %c0_6 = arith.constant 0 : index
    %c0_7 = arith.constant 0 : index
    %c0_8 = arith.constant 0 : index
    %8 = vector.load %arg2[%c0_6, %c0_7, %c0_8] : memref<1x8x8xf32, #tpu.memory_space<vmem>>, vector<1x8x8xf32>
    %9 = vector.shape_cast %8 : vector<1x8x8xf32> to vector<8x8xf32>
    %c0_9 = arith.constant 0 : index
    %c0_10 = arith.constant 0 : index
    %10 = vector.load %arg5[%c0_9, %c0_10] : memref<32x32xf32, #tpu.memory_space<vmem>>, vector<32x32xf32>
    %cst_11 = arith.constant 0.000000e+00 : f32
    %11 = vector.broadcast %cst_11 : f32 to vector<8x32xf32>
    %12 = vector.extract_strided_slice %7 {offsets = [0, 0], sizes = [8, 8], strides = [1, 1]} : vector<8x96xf32> to vector<8x8xf32>
    %13 = arith.truncf %12 : vector<8x8xf32> to vector<8x8xbf16>
    %14 = vector.extract_strided_slice %7 {offsets = [0, 32], sizes = [8, 8], strides = [1, 1]} : vector<8x96xf32> to vector<8x8xf32>
    %15 = arith.truncf %14 : vector<8x8xf32> to vector<8x8xbf16>
    %16 = vector.extract_strided_slice %7 {offsets = [0, 64], sizes = [8, 8], strides = [1, 1]} : vector<8x96xf32> to vector<8x8xf32>
    %17 = arith.truncf %16 : vector<8x8xf32> to vector<8x8xbf16>
    "tpu.trace_start"() <{level = 10 : i32, message = "qd,kd->qk"}> : () -> ()
    %cst_12 = arith.constant dense<0.000000e+00> : vector<8x8xf32>
    %18 = tpu.matmul %13, %15, %cst_12 {dimension_numbers = #tpu.dot_dimension_numbers<[1], [1], [0], [0], [0, 0, 1, 0], [], []>} : vector<8x8xbf16>, vector<8x8xbf16>, vector<8x8xf32> -> vector<8x8xf32>
    "tpu.trace_stop"() : () -> ()
    %cst_13 = arith.constant 0.353553385 : f32
    %19 = vector.broadcast %cst_13 : f32 to vector<8x8xf32>
    %20 = arith.mulf %18, %19 : vector<8x8xf32>
    %21 = arith.addf %20, %9 : vector<8x8xf32>
    %cst_14 = arith.constant dense<0xFF800000> : vector<8xf32>
    %22 = vector.multi_reduction <maximumf>, %21, %cst_14 [1] : vector<8x8xf32> to vector<8xf32>
    %23 = vector.shape_cast %22 : vector<8xf32> to vector<8x1xf32>
    %24 = vector.broadcast %23 : vector<8x1xf32> to vector<8x8xf32>
    %25 = arith.subf %21, %24 : vector<8x8xf32>
    %26 = math.exp %25 : vector<8x8xf32>
    %cst_15 = arith.constant dense<0.000000e+00> : vector<8xf32>
    %27 = vector.multi_reduction <add>, %26, %cst_15 [1] : vector<8x8xf32> to vector<8xf32>
    %28 = vector.shape_cast %27 : vector<8xf32> to vector<8x1xf32>
    %29 = tpu.reciprocal %28 {approx = true} : vector<8x1xf32> -> vector<8x1xf32>
    %30 = vector.broadcast %29 : vector<8x1xf32> to vector<8x8xf32>
    %31 = arith.mulf %26, %30 : vector<8x8xf32>
    %32 = arith.truncf %31 : vector<8x8xf32> to vector<8x8xbf16>
    %cst_16 = arith.constant dense<0.000000e+00> : vector<8x8xf32>
    %33 = tpu.matmul %32, %17, %cst_16 {dimension_numbers = #tpu.dot_dimension_numbers<[1], [0], [0], [1], [0, 0, 1, 1], [], []>} : vector<8x8xbf16>, vector<8x8xbf16>, vector<8x8xf32> -> vector<8x8xf32>
    %34 = arith.truncf %33 : vector<8x8xf32> to vector<8x8xbf16>
    %35 = vector.extract_strided_slice %10 {offsets = [0, 0], sizes = [8, 32], strides = [1, 1]} : vector<32x32xf32> to vector<8x32xf32>
    %36 = arith.truncf %35 : vector<8x32xf32> to vector<8x32xbf16>
    %cst_17 = arith.constant dense<0.000000e+00> : vector<8x32xf32>
    %37 = tpu.matmul %34, %36, %cst_17 {dimension_numbers = #tpu.dot_dimension_numbers<[1], [0], [0], [1], [0, 0, 1, 1], [], []>} : vector<8x8xbf16>, vector<8x32xbf16>, vector<8x32xf32> -> vector<8x32xf32>
    %38 = arith.addf %11, %37 : vector<8x32xf32>
    %39 = vector.extract_strided_slice %7 {offsets = [0, 8], sizes = [8, 8], strides = [1, 1]} : vector<8x96xf32> to vector<8x8xf32>
    %40 = arith.truncf %39 : vector<8x8xf32> to vector<8x8xbf16>
    %41 = vector.extract_strided_slice %7 {offsets = [0, 40], sizes = [8, 8], strides = [1, 1]} : vector<8x96xf32> to vector<8x8xf32>
    %42 = arith.truncf %41 : vector<8x8xf32> to vector<8x8xbf16>
    %43 = vector.extract_strided_slice %7 {offsets = [0, 72], sizes = [8, 8], strides = [1, 1]} : vector<8x96xf32> to vector<8x8xf32>
    %44 = arith.truncf %43 : vector<8x8xf32> to vector<8x8xbf16>
    "tpu.trace_start"() <{level = 10 : i32, message = "qd,kd->qk"}> : () -> ()
    %cst_18 = arith.constant dense<0.000000e+00> : vector<8x8xf32>
    %45 = tpu.matmul %40, %42, %cst_18 {dimension_numbers = #tpu.dot_dimension_numbers<[1], [1], [0], [0], [0, 0, 1, 0], [], []>} : vector<8x8xbf16>, vector<8x8xbf16>, vector<8x8xf32> -> vector<8x8xf32>
    "tpu.trace_stop"() : () -> ()
    %cst_19 = arith.constant 0.353553385 : f32
    %46 = vector.broadcast %cst_19 : f32 to vector<8x8xf32>
    %47 = arith.mulf %45, %46 : vector<8x8xf32>
    %48 = arith.addf %47, %9 : vector<8x8xf32>
    %cst_20 = arith.constant dense<0xFF800000> : vector<8xf32>
    %49 = vector.multi_reduction <maximumf>, %48, %cst_20 [1] : vector<8x8xf32> to vector<8xf32>
    %50 = vector.shape_cast %49 : vector<8xf32> to vector<8x1xf32>
    %51 = vector.broadcast %50 : vector<8x1xf32> to vector<8x8xf32>
    %52 = arith.subf %48, %51 : vector<8x8xf32>
    %53 = math.exp %52 : vector<8x8xf32>
    %cst_21 = arith.constant dense<0.000000e+00> : vector<8xf32>
    %54 = vector.multi_reduction <add>, %53, %cst_21 [1] : vector<8x8xf32> to vector<8xf32>
    %55 = vector.shape_cast %54 : vector<8xf32> to vector<8x1xf32>
    %56 = tpu.reciprocal %55 {approx = true} : vector<8x1xf32> -> vector<8x1xf32>
    %57 = vector.broadcast %56 : vector<8x1xf32> to vector<8x8xf32>
    %58 = arith.mulf %53, %57 : vector<8x8xf32>
    %59 = arith.truncf %58 : vector<8x8xf32> to vector<8x8xbf16>
    %cst_22 = arith.constant dense<0.000000e+00> : vector<8x8xf32>
    %60 = tpu.matmul %59, %44, %cst_22 {dimension_numbers = #tpu.dot_dimension_numbers<[1], [0], [0], [1], [0, 0, 1, 1], [], []>} : vector<8x8xbf16>, vector<8x8xbf16>, vector<8x8xf32> -> vector<8x8xf32>
    %61 = arith.truncf %60 : vector<8x8xf32> to vector<8x8xbf16>
    %62 = vector.extract_strided_slice %10 {offsets = [8, 0], sizes = [8, 32], strides = [1, 1]} : vector<32x32xf32> to vector<8x32xf32>
    %63 = arith.truncf %62 : vector<8x32xf32> to vector<8x32xbf16>
    %cst_23 = arith.constant dense<0.000000e+00> : vector<8x32xf32>
    %64 = tpu.matmul %61, %63, %cst_23 {dimension_numbers = #tpu.dot_dimension_numbers<[1], [0], [0], [1], [0, 0, 1, 1], [], []>} : vector<8x8xbf16>, vector<8x32xbf16>, vector<8x32xf32> -> vector<8x32xf32>
    %65 = arith.addf %38, %64 : vector<8x32xf32>
    %66 = vector.extract_strided_slice %7 {offsets = [0, 16], sizes = [8, 8], strides = [1, 1]} : vector<8x96xf32> to vector<8x8xf32>
    %67 = arith.truncf %66 : vector<8x8xf32> to vector<8x8xbf16>
    %68 = vector.extract_strided_slice %7 {offsets = [0, 48], sizes = [8, 8], strides = [1, 1]} : vector<8x96xf32> to vector<8x8xf32>
    %69 = arith.truncf %68 : vector<8x8xf32> to vector<8x8xbf16>
    %70 = vector.extract_strided_slice %7 {offsets = [0, 80], sizes = [8, 8], strides = [1, 1]} : vector<8x96xf32> to vector<8x8xf32>
    %71 = arith.truncf %70 : vector<8x8xf32> to vector<8x8xbf16>
    "tpu.trace_start"() <{level = 10 : i32, message = "qd,kd->qk"}> : () -> ()
    %cst_24 = arith.constant dense<0.000000e+00> : vector<8x8xf32>
    %72 = tpu.matmul %67, %69, %cst_24 {dimension_numbers = #tpu.dot_dimension_numbers<[1], [1], [0], [0], [0, 0, 1, 0], [], []>} : vector<8x8xbf16>, vector<8x8xbf16>, vector<8x8xf32> -> vector<8x8xf32>
    "tpu.trace_stop"() : () -> ()
    %cst_25 = arith.constant 0.353553385 : f32
    %73 = vector.broadcast %cst_25 : f32 to vector<8x8xf32>
    %74 = arith.mulf %72, %73 : vector<8x8xf32>
    %75 = arith.addf %74, %9 : vector<8x8xf32>
    %cst_26 = arith.constant dense<0xFF800000> : vector<8xf32>
    %76 = vector.multi_reduction <maximumf>, %75, %cst_26 [1] : vector<8x8xf32> to vector<8xf32>
    %77 = vector.shape_cast %76 : vector<8xf32> to vector<8x1xf32>
    %78 = vector.broadcast %77 : vector<8x1xf32> to vector<8x8xf32>
    %79 = arith.subf %75, %78 : vector<8x8xf32>
    %80 = math.exp %79 : vector<8x8xf32>
    %cst_27 = arith.constant dense<0.000000e+00> : vector<8xf32>
    %81 = vector.multi_reduction <add>, %80, %cst_27 [1] : vector<8x8xf32> to vector<8xf32>
    %82 = vector.shape_cast %81 : vector<8xf32> to vector<8x1xf32>
    %83 = tpu.reciprocal %82 {approx = true} : vector<8x1xf32> -> vector<8x1xf32>
    %84 = vector.broadcast %83 : vector<8x1xf32> to vector<8x8xf32>
    %85 = arith.mulf %80, %84 : vector<8x8xf32>
    %86 = arith.truncf %85 : vector<8x8xf32> to vector<8x8xbf16>
    %cst_28 = arith.constant dense<0.000000e+00> : vector<8x8xf32>
    %87 = tpu.matmul %86, %71, %cst_28 {dimension_numbers = #tpu.dot_dimension_numbers<[1], [0], [0], [1], [0, 0, 1, 1], [], []>} : vector<8x8xbf16>, vector<8x8xbf16>, vector<8x8xf32> -> vector<8x8xf32>
    %88 = arith.truncf %87 : vector<8x8xf32> to vector<8x8xbf16>
    %89 = vector.extract_strided_slice %10 {offsets = [16, 0], sizes = [8, 32], strides = [1, 1]} : vector<32x32xf32> to vector<8x32xf32>
    %90 = arith.truncf %89 : vector<8x32xf32> to vector<8x32xbf16>
    %cst_29 = arith.constant dense<0.000000e+00> : vector<8x32xf32>
    %91 = tpu.matmul %88, %90, %cst_29 {dimension_numbers = #tpu.dot_dimension_numbers<[1], [0], [0], [1], [0, 0, 1, 1], [], []>} : vector<8x8xbf16>, vector<8x32xbf16>, vector<8x32xf32> -> vector<8x32xf32>
    %92 = arith.addf %65, %91 : vector<8x32xf32>
    %93 = vector.extract_strided_slice %7 {offsets = [0, 24], sizes = [8, 8], strides = [1, 1]} : vector<8x96xf32> to vector<8x8xf32>
    %94 = arith.truncf %93 : vector<8x8xf32> to vector<8x8xbf16>
    %95 = vector.extract_strided_slice %7 {offsets = [0, 56], sizes = [8, 8], strides = [1, 1]} : vector<8x96xf32> to vector<8x8xf32>
    %96 = arith.truncf %95 : vector<8x8xf32> to vector<8x8xbf16>
    %97 = vector.extract_strided_slice %7 {offsets = [0, 88], sizes = [8, 8], strides = [1, 1]} : vector<8x96xf32> to vector<8x8xf32>
    %98 = arith.truncf %97 : vector<8x8xf32> to vector<8x8xbf16>
    "tpu.trace_start"() <{level = 10 : i32, message = "qd,kd->qk"}> : () -> ()
    %cst_30 = arith.constant dense<0.000000e+00> : vector<8x8xf32>
    %99 = tpu.matmul %94, %96, %cst_30 {dimension_numbers = #tpu.dot_dimension_numbers<[1], [1], [0], [0], [0, 0, 1, 0], [], []>} : vector<8x8xbf16>, vector<8x8xbf16>, vector<8x8xf32> -> vector<8x8xf32>
    "tpu.trace_stop"() : () -> ()
    %cst_31 = arith.constant 0.353553385 : f32
    %100 = vector.broadcast %cst_31 : f32 to vector<8x8xf32>
    %101 = arith.mulf %99, %100 : vector<8x8xf32>
    %102 = arith.addf %101, %9 : vector<8x8xf32>
    %cst_32 = arith.constant dense<0xFF800000> : vector<8xf32>
    %103 = vector.multi_reduction <maximumf>, %102, %cst_32 [1] : vector<8x8xf32> to vector<8xf32>
    %104 = vector.shape_cast %103 : vector<8xf32> to vector<8x1xf32>
    %105 = vector.broadcast %104 : vector<8x1xf32> to vector<8x8xf32>
    %106 = arith.subf %102, %105 : vector<8x8xf32>
    %107 = math.exp %106 : vector<8x8xf32>
    %cst_33 = arith.constant dense<0.000000e+00> : vector<8xf32>
    %108 = vector.multi_reduction <add>, %107, %cst_33 [1] : vector<8x8xf32> to vector<8xf32>
    %109 = vector.shape_cast %108 : vector<8xf32> to vector<8x1xf32>
    %110 = tpu.reciprocal %109 {approx = true} : vector<8x1xf32> -> vector<8x1xf32>
    %111 = vector.broadcast %110 : vector<8x1xf32> to vector<8x8xf32>
    %112 = arith.mulf %107, %111 : vector<8x8xf32>
    %113 = arith.truncf %112 : vector<8x8xf32> to vector<8x8xbf16>
    %cst_34 = arith.constant dense<0.000000e+00> : vector<8x8xf32>
    %114 = tpu.matmul %113, %98, %cst_34 {dimension_numbers = #tpu.dot_dimension_numbers<[1], [0], [0], [1], [0, 0, 1, 1], [], []>} : vector<8x8xbf16>, vector<8x8xbf16>, vector<8x8xf32> -> vector<8x8xf32>
    %115 = arith.truncf %114 : vector<8x8xf32> to vector<8x8xbf16>
    %116 = vector.extract_strided_slice %10 {offsets = [24, 0], sizes = [8, 32], strides = [1, 1]} : vector<32x32xf32> to vector<8x32xf32>
    %117 = arith.truncf %116 : vector<8x32xf32> to vector<8x32xbf16>
    %cst_35 = arith.constant dense<0.000000e+00> : vector<8x32xf32>
    %118 = tpu.matmul %115, %117, %cst_35 {dimension_numbers = #tpu.dot_dimension_numbers<[1], [0], [0], [1], [0, 0, 1, 1], [], []>} : vector<8x8xbf16>, vector<8x32xbf16>, vector<8x32xf32> -> vector<8x32xf32>
    %119 = arith.addf %92, %118 : vector<8x32xf32>
    %c0_36 = arith.constant 0 : index
    %c0_37 = arith.constant 0 : index
    %120 = vector.load %arg6[%c0_36, %c0_37] : memref<1x32xf32, #tpu.memory_space<vmem>>, vector<1x32xf32>
    %121 = vector.broadcast %120 : vector<1x32xf32> to vector<8x32xf32>
    %122 = arith.addf %119, %121 : vector<8x32xf32>
    %123 = arith.addf %122, %1 : vector<8x32xf32>
    %cst_38 = arith.constant dense<0.000000e+00> : vector<8xf32>
    %124 = vector.multi_reduction <add>, %123, %cst_38 [1] : vector<8x32xf32> to vector<8xf32>
    %125 = vector.shape_cast %124 : vector<8xf32> to vector<8x1xf32>
    %cst_39 = arith.constant 3.200000e+01 : f32
    %126 = vector.broadcast %cst_39 : f32 to vector<8x1xf32>
    %127 = arith.divf %125, %126 : vector<8x1xf32>
    %128 = vector.broadcast %127 : vector<8x1xf32> to vector<8x32xf32>
    %129 = arith.subf %123, %128 : vector<8x32xf32>
    %130 = arith.mulf %129, %129 : vector<8x32xf32>
    %cst_40 = arith.constant dense<0.000000e+00> : vector<8xf32>
    %131 = vector.multi_reduction <add>, %130, %cst_40 [1] : vector<8x32xf32> to vector<8xf32>
    %132 = vector.shape_cast %131 : vector<8xf32> to vector<8x1xf32>
    %cst_41 = arith.constant 3.200000e+01 : f32
    %133 = vector.broadcast %cst_41 : f32 to vector<8x1xf32>
    %134 = arith.divf %132, %133 : vector<8x1xf32>
    %135 = vector.broadcast %127 : vector<8x1xf32> to vector<8x32xf32>
    %136 = arith.subf %123, %135 : vector<8x32xf32>
    %cst_42 = arith.constant 9.99999974E-6 : f32
    %137 = vector.broadcast %cst_42 : f32 to vector<8x1xf32>
    %138 = arith.addf %134, %137 : vector<8x1xf32>
    %139 = math.rsqrt %138 : vector<8x1xf32>
    %140 = vector.broadcast %139 : vector<8x1xf32> to vector<8x32xf32>
    %141 = arith.mulf %136, %140 : vector<8x32xf32>
    %c0_43 = arith.constant 0 : index
    %c0_44 = arith.constant 0 : index
    %142 = vector.load %arg7[%c0_43, %c0_44] : memref<1x32xf32, #tpu.memory_space<vmem>>, vector<1x32xf32>
    %143 = vector.broadcast %142 : vector<1x32xf32> to vector<8x32xf32>
    %144 = arith.mulf %141, %143 : vector<8x32xf32>
    %c0_45 = arith.constant 0 : index
    %c0_46 = arith.constant 0 : index
    %145 = vector.load %arg8[%c0_45, %c0_46] : memref<1x32xf32, #tpu.memory_space<vmem>>, vector<1x32xf32>
    %146 = vector.broadcast %145 : vector<1x32xf32> to vector<8x32xf32>
    %147 = arith.addf %144, %146 : vector<8x32xf32>
    %c0_47 = arith.constant 0 : index
    %c0_48 = arith.constant 0 : index
    %c0_49 = arith.constant 0 : index
    %148 = vector.load %arg9[%c0_47, %c0_48, %c0_49] : memref<1x8x32xf32, #tpu.memory_space<vmem>>, vector<1x8x32xf32>
    %149 = vector.shape_cast %148 : vector<1x8x32xf32> to vector<8x32xf32>
    %150 = vector.shape_cast %147 : vector<8x32xf32> to vector<1x8x32xf32>
    tpu.vector_store %arg9[%c0_47, %c0_48, %c0_49], %150 {strides = array<i32>} : memref<1x8x32xf32, #tpu.memory_space<vmem>>, vector<1x8x32xf32>,
    return
  }
  func.func @transform_0(%arg0: i32) -> (i32, i32, i32) {
    %c0_i32 = arith.constant 0 : i32
    %c0_i32_0 = arith.constant 0 : i32
    %c0_i32_1 = arith.constant 0 : i32
    return %arg0, %c0_i32, %c0_i32_0 : i32, i32, i32
  }
  func.func @transform_1(%arg0: i32) -> (i32, i32, i32) {
    %c0_i32 = arith.constant 0 : i32
    %c0_i32_0 = arith.constant 0 : i32
    %c0_i32_1 = arith.constant 0 : i32
    return %arg0, %c0_i32, %c0_i32_0 : i32, i32, i32
  }
  func.func @transform_2(%arg0: i32) -> (i32, i32) {
    %c0_i32 = arith.constant 0 : i32
    %c0_i32_0 = arith.constant 0 : i32
    %c0_i32_1 = arith.constant 0 : i32
    return %c0_i32, %c0_i32_0 : i32, i32
  }
  func.func @transform_3(%arg0: i32) -> (i32, i32) {
    %c0_i32 = arith.constant 0 : i32
    %c0_i32_0 = arith.constant 0 : i32
    %c0_i32_1 = arith.constant 0 : i32
    return %c0_i32, %c0_i32_0 : i32, i32
  }
  func.func @transform_4(%arg0: i32) -> (i32, i32) {
    %c0_i32 = arith.constant 0 : i32
    %c0_i32_0 = arith.constant 0 : i32
    %c0_i32_1 = arith.constant 0 : i32
    return %c0_i32, %c0_i32_0 : i32, i32
  }
  func.func @transform_5(%arg0: i32) -> (i32, i32) {
    %c0_i32 = arith.constant 0 : i32
    %c0_i32_0 = arith.constant 0 : i32
    %c0_i32_1 = arith.constant 0 : i32
    return %c0_i32, %c0_i32_0 : i32, i32
  }
  func.func @transform_6(%arg0: i32) -> (i32, i32) {
    %c0_i32 = arith.constant 0 : i32
    %c0_i32_0 = arith.constant 0 : i32
    %c0_i32_1 = arith.constant 0 : i32
    return %c0_i32, %c0_i32_0 : i32, i32
  }
  func.func @transform_7(%arg0: i32) -> (i32, i32) {
    %c0_i32 = arith.constant 0 : i32
    %c0_i32_0 = arith.constant 0 : i32
    %c0_i32_1 = arith.constant 0 : i32
    return %c0_i32, %c0_i32_0 : i32, i32
  }
  func.func @transform_8(%arg0: i32) -> (i32, i32, i32) {
    %c0_i32 = arith.constant 0 : i32
    %c0_i32_0 = arith.constant 0 : i32
    %c0_i32_1 = arith.constant 0 : i32
    return %arg0, %c0_i32, %c0_i32_0 : i32, i32, i32
  }
}

module attributes {stable_mosaic.version = 11 : i64} {
  func.func @_cross_attn_block_kernel(%arg0: i32, %arg1: memref<1x8x32xf32, #tpu.memory_space<vmem>>, %arg2: memref<1x8x32xf32, #tpu.memory_space<vmem>>, %arg3: memref<32x32xbf16, #tpu.memory_space<vmem>>, %arg4: memref<1x32xf32, #tpu.memory_space<vmem>>, %arg5: memref<32x64xbf16, #tpu.memory_space<vmem>>, %arg6: memref<1x64xf32, #tpu.memory_space<vmem>>, %arg7: memref<32x32xf32, #tpu.memory_space<vmem>>, %arg8: memref<1x32xf32, #tpu.memory_space<vmem>>, %arg9: memref<1x32xf32, #tpu.memory_space<vmem>>, %arg10: memref<1x32xf32, #tpu.memory_space<vmem>>, %arg11: memref<1x8x32xf32, #tpu.memory_space<vmem>>) attributes {dimension_semantics = [#tpu.dimension_semantics<parallel>], iteration_bounds = array<i64: 2>, scalar_prefetch = 0 : i64, scratch_operands = 0 : i64, tpu.core_type = #tpu.core_type<tc>, window_params = [{transform_indices = @transform_0, window_bounds = array<i64: 1, 8, 32>}, {transform_indices = @transform_1, window_bounds = array<i64: 1, 8, 32>}, {pipeline_mode = #tpu.pipeline_mode<synchronous>, transform_indices = @transform_2, window_bounds = array<i64: 32, 32>}, {pipeline_mode = #tpu.pipeline_mode<synchronous>, transform_indices = @transform_3, window_bounds = array<i64: 1, 32>}, {pipeline_mode = #tpu.pipeline_mode<synchronous>, transform_indices = @transform_4, window_bounds = array<i64: 32, 64>}, {pipeline_mode = #tpu.pipeline_mode<synchronous>, transform_indices = @transform_5, window_bounds = array<i64: 1, 64>}, {pipeline_mode = #tpu.pipeline_mode<synchronous>, transform_indices = @transform_6, window_bounds = array<i64: 32, 32>}, {pipeline_mode = #tpu.pipeline_mode<synchronous>, transform_indices = @transform_7, window_bounds = array<i64: 1, 32>}, {pipeline_mode = #tpu.pipeline_mode<synchronous>, transform_indices = @transform_8, window_bounds = array<i64: 1, 32>}, {pipeline_mode = #tpu.pipeline_mode<synchronous>, transform_indices = @transform_9, window_bounds = array<i64: 1, 32>}, {transform_indices = @transform_10, window_bounds = array<i64: 1, 8, 32>}]} {
    %c0 = arith.constant 0 : index
    %c0_0 = arith.constant 0 : index
    %c0_1 = arith.constant 0 : index
    %0 = vector.load %arg1[%c0, %c0_0, %c0_1] : memref<1x8x32xf32, #tpu.memory_space<vmem>>, vector<1x8x32xf32>
    %1 = vector.shape_cast %0 : vector<1x8x32xf32> to vector<8x32xf32>
    %c0_2 = arith.constant 0 : index
    %c0_3 = arith.constant 0 : index
    %c0_4 = arith.constant 0 : index
    %2 = vector.load %arg2[%c0_2, %c0_3, %c0_4] : memref<1x8x32xf32, #tpu.memory_space<vmem>>, vector<1x8x32xf32>
    %3 = vector.shape_cast %2 : vector<1x8x32xf32> to vector<8x32xf32>
    %4 = arith.truncf %1 : vector<8x32xf32> to vector<8x32xbf16>
    %c0_5 = arith.constant 0 : index
    %c0_6 = arith.constant 0 : index
    %5 = vector.load %arg3[%c0_5, %c0_6] : memref<32x32xbf16, #tpu.memory_space<vmem>>, vector<32x32xbf16>
    %cst = arith.constant dense<0.000000e+00> : vector<8x32xf32>
    %6 = tpu.matmul %4, %5, %cst {dimension_numbers = #tpu.dot_dimension_numbers<[1], [0], [0], [1], [0, 0, 1, 1], [], []>} : vector<8x32xbf16>, vector<32x32xbf16>, vector<8x32xf32> -> vector<8x32xf32>
    %c0_7 = arith.constant 0 : index
    %c0_8 = arith.constant 0 : index
    %7 = vector.load %arg4[%c0_7, %c0_8] : memref<1x32xf32, #tpu.memory_space<vmem>>, vector<1x32xf32>
    %8 = vector.broadcast %7 : vector<1x32xf32> to vector<8x32xf32>
    %9 = arith.addf %6, %8 : vector<8x32xf32>
    %10 = arith.truncf %3 : vector<8x32xf32> to vector<8x32xbf16>
    %c0_9 = arith.constant 0 : index
    %c0_10 = arith.constant 0 : index
    %11 = vector.load %arg5[%c0_9, %c0_10] : memref<32x64xbf16, #tpu.memory_space<vmem>>, vector<32x64xbf16>
    %cst_11 = arith.constant dense<0.000000e+00> : vector<8x64xf32>
    %12 = tpu.matmul %10, %11, %cst_11 {dimension_numbers = #tpu.dot_dimension_numbers<[1], [0], [0], [1], [0, 0, 1, 1], [], []>} : vector<8x32xbf16>, vector<32x64xbf16>, vector<8x64xf32> -> vector<8x64xf32>
    %c0_12 = arith.constant 0 : index
    %c0_13 = arith.constant 0 : index
    %13 = vector.load %arg6[%c0_12, %c0_13] : memref<1x64xf32, #tpu.memory_space<vmem>>, vector<1x64xf32>
    %14 = vector.broadcast %13 : vector<1x64xf32> to vector<8x64xf32>
    %15 = arith.addf %12, %14 : vector<8x64xf32>
    %c0_14 = arith.constant 0 : index
    %c0_15 = arith.constant 0 : index
    %16 = vector.load %arg7[%c0_14, %c0_15] : memref<32x32xf32, #tpu.memory_space<vmem>>, vector<32x32xf32>
    %cst_16 = arith.constant 0.000000e+00 : f32
    %17 = vector.broadcast %cst_16 : f32 to vector<8x32xf32>
    %18 = vector.extract_strided_slice %9 {offsets = [0, 0], sizes = [8, 8], strides = [1, 1]} : vector<8x32xf32> to vector<8x8xf32>
    %19 = arith.truncf %18 : vector<8x8xf32> to vector<8x8xbf16>
    %20 = vector.extract_strided_slice %15 {offsets = [0, 0], sizes = [8, 8], strides = [1, 1]} : vector<8x64xf32> to vector<8x8xf32>
    %21 = arith.truncf %20 : vector<8x8xf32> to vector<8x8xbf16>
    %22 = vector.extract_strided_slice %15 {offsets = [0, 32], sizes = [8, 8], strides = [1, 1]} : vector<8x64xf32> to vector<8x8xf32>
    %23 = arith.truncf %22 : vector<8x8xf32> to vector<8x8xbf16>
    "tpu.trace_start"() <{level = 10 : i32, message = "qd,kd->qk"}> : () -> ()
    %cst_17 = arith.constant dense<0.000000e+00> : vector<8x8xf32>
    %24 = tpu.matmul %19, %21, %cst_17 {dimension_numbers = #tpu.dot_dimension_numbers<[1], [1], [0], [0], [0, 0, 1, 0], [], []>} : vector<8x8xbf16>, vector<8x8xbf16>, vector<8x8xf32> -> vector<8x8xf32>
    "tpu.trace_stop"() : () -> ()
    %cst_18 = arith.constant 0.353553385 : f32
    %25 = vector.broadcast %cst_18 : f32 to vector<8x8xf32>
    %26 = arith.mulf %24, %25 : vector<8x8xf32>
    %cst_19 = arith.constant dense<0xFF800000> : vector<8xf32>
    %27 = vector.multi_reduction <maximumf>, %26, %cst_19 [1] : vector<8x8xf32> to vector<8xf32>
    %28 = vector.shape_cast %27 : vector<8xf32> to vector<8x1xf32>
    %29 = vector.broadcast %28 : vector<8x1xf32> to vector<8x8xf32>
    %30 = arith.subf %26, %29 : vector<8x8xf32>
    %31 = math.exp %30 : vector<8x8xf32>
    %cst_20 = arith.constant dense<0.000000e+00> : vector<8xf32>
    %32 = vector.multi_reduction <add>, %31, %cst_20 [1] : vector<8x8xf32> to vector<8xf32>
    %33 = vector.shape_cast %32 : vector<8xf32> to vector<8x1xf32>
    %34 = tpu.reciprocal %33 {approx = true} : vector<8x1xf32> -> vector<8x1xf32>
    %35 = vector.broadcast %34 : vector<8x1xf32> to vector<8x8xf32>
    %36 = arith.mulf %31, %35 : vector<8x8xf32>
    %37 = arith.truncf %36 : vector<8x8xf32> to vector<8x8xbf16>
    %cst_21 = arith.constant dense<0.000000e+00> : vector<8x8xf32>
    %38 = tpu.matmul %37, %23, %cst_21 {dimension_numbers = #tpu.dot_dimension_numbers<[1], [0], [0], [1], [0, 0, 1, 1], [], []>} : vector<8x8xbf16>, vector<8x8xbf16>, vector<8x8xf32> -> vector<8x8xf32>
    %39 = arith.truncf %38 : vector<8x8xf32> to vector<8x8xbf16>
    %40 = vector.extract_strided_slice %16 {offsets = [0, 0], sizes = [8, 32], strides = [1, 1]} : vector<32x32xf32> to vector<8x32xf32>
    %41 = arith.truncf %40 : vector<8x32xf32> to vector<8x32xbf16>
    %cst_22 = arith.constant dense<0.000000e+00> : vector<8x32xf32>
    %42 = tpu.matmul %39, %41, %cst_22 {dimension_numbers = #tpu.dot_dimension_numbers<[1], [0], [0], [1], [0, 0, 1, 1], [], []>} : vector<8x8xbf16>, vector<8x32xbf16>, vector<8x32xf32> -> vector<8x32xf32>
    %43 = arith.addf %17, %42 : vector<8x32xf32>
    %44 = vector.extract_strided_slice %9 {offsets = [0, 8], sizes = [8, 8], strides = [1, 1]} : vector<8x32xf32> to vector<8x8xf32>
    %45 = arith.truncf %44 : vector<8x8xf32> to vector<8x8xbf16>
    %46 = vector.extract_strided_slice %15 {offsets = [0, 8], sizes = [8, 8], strides = [1, 1]} : vector<8x64xf32> to vector<8x8xf32>
    %47 = arith.truncf %46 : vector<8x8xf32> to vector<8x8xbf16>
    %48 = vector.extract_strided_slice %15 {offsets = [0, 40], sizes = [8, 8], strides = [1, 1]} : vector<8x64xf32> to vector<8x8xf32>
    %49 = arith.truncf %48 : vector<8x8xf32> to vector<8x8xbf16>
    "tpu.trace_start"() <{level = 10 : i32, message = "qd,kd->qk"}> : () -> ()
    %cst_23 = arith.constant dense<0.000000e+00> : vector<8x8xf32>
    %50 = tpu.matmul %45, %47, %cst_23 {dimension_numbers = #tpu.dot_dimension_numbers<[1], [1], [0], [0], [0, 0, 1, 0], [], []>} : vector<8x8xbf16>, vector<8x8xbf16>, vector<8x8xf32> -> vector<8x8xf32>
    "tpu.trace_stop"() : () -> ()
    %cst_24 = arith.constant 0.353553385 : f32
    %51 = vector.broadcast %cst_24 : f32 to vector<8x8xf32>
    %52 = arith.mulf %50, %51 : vector<8x8xf32>
    %cst_25 = arith.constant dense<0xFF800000> : vector<8xf32>
    %53 = vector.multi_reduction <maximumf>, %52, %cst_25 [1] : vector<8x8xf32> to vector<8xf32>
    %54 = vector.shape_cast %53 : vector<8xf32> to vector<8x1xf32>
    %55 = vector.broadcast %54 : vector<8x1xf32> to vector<8x8xf32>
    %56 = arith.subf %52, %55 : vector<8x8xf32>
    %57 = math.exp %56 : vector<8x8xf32>
    %cst_26 = arith.constant dense<0.000000e+00> : vector<8xf32>
    %58 = vector.multi_reduction <add>, %57, %cst_26 [1] : vector<8x8xf32> to vector<8xf32>
    %59 = vector.shape_cast %58 : vector<8xf32> to vector<8x1xf32>
    %60 = tpu.reciprocal %59 {approx = true} : vector<8x1xf32> -> vector<8x1xf32>
    %61 = vector.broadcast %60 : vector<8x1xf32> to vector<8x8xf32>
    %62 = arith.mulf %57, %61 : vector<8x8xf32>
    %63 = arith.truncf %62 : vector<8x8xf32> to vector<8x8xbf16>
    %cst_27 = arith.constant dense<0.000000e+00> : vector<8x8xf32>
    %64 = tpu.matmul %63, %49, %cst_27 {dimension_numbers = #tpu.dot_dimension_numbers<[1], [0], [0], [1], [0, 0, 1, 1], [], []>} : vector<8x8xbf16>, vector<8x8xbf16>, vector<8x8xf32> -> vector<8x8xf32>
    %65 = arith.truncf %64 : vector<8x8xf32> to vector<8x8xbf16>
    %66 = vector.extract_strided_slice %16 {offsets = [8, 0], sizes = [8, 32], strides = [1, 1]} : vector<32x32xf32> to vector<8x32xf32>
    %67 = arith.truncf %66 : vector<8x32xf32> to vector<8x32xbf16>
    %cst_28 = arith.constant dense<0.000000e+00> : vector<8x32xf32>
    %68 = tpu.matmul %65, %67, %cst_28 {dimension_numbers = #tpu.dot_dimension_numbers<[1], [0], [0], [1], [0, 0, 1, 1], [], []>} : vector<8x8xbf16>, vector<8x32xbf16>, vector<8x32xf32> -> vector<8x32xf32>
    %69 = arith.addf %43, %68 : vector<8x32xf32>
    %70 = vector.extract_strided_slice %9 {offsets = [0, 16], sizes = [8, 8], strides = [1, 1]} : vector<8x32xf32> to vector<8x8xf32>
    %71 = arith.truncf %70 : vector<8x8xf32> to vector<8x8xbf16>
    %72 = vector.extract_strided_slice %15 {offsets = [0, 16], sizes = [8, 8], strides = [1, 1]} : vector<8x64xf32> to vector<8x8xf32>
    %73 = arith.truncf %72 : vector<8x8xf32> to vector<8x8xbf16>
    %74 = vector.extract_strided_slice %15 {offsets = [0, 48], sizes = [8, 8], strides = [1, 1]} : vector<8x64xf32> to vector<8x8xf32>
    %75 = arith.truncf %74 : vector<8x8xf32> to vector<8x8xbf16>
    "tpu.trace_start"() <{level = 10 : i32, message = "qd,kd->qk"}> : () -> ()
    %cst_29 = arith.constant dense<0.000000e+00> : vector<8x8xf32>
    %76 = tpu.matmul %71, %73, %cst_29 {dimension_numbers = #tpu.dot_dimension_numbers<[1], [1], [0], [0], [0, 0, 1, 0], [], []>} : vector<8x8xbf16>, vector<8x8xbf16>, vector<8x8xf32> -> vector<8x8xf32>
    "tpu.trace_stop"() : () -> ()
    %cst_30 = arith.constant 0.353553385 : f32
    %77 = vector.broadcast %cst_30 : f32 to vector<8x8xf32>
    %78 = arith.mulf %76, %77 : vector<8x8xf32>
    %cst_31 = arith.constant dense<0xFF800000> : vector<8xf32>
    %79 = vector.multi_reduction <maximumf>, %78, %cst_31 [1] : vector<8x8xf32> to vector<8xf32>
    %80 = vector.shape_cast %79 : vector<8xf32> to vector<8x1xf32>
    %81 = vector.broadcast %80 : vector<8x1xf32> to vector<8x8xf32>
    %82 = arith.subf %78, %81 : vector<8x8xf32>
    %83 = math.exp %82 : vector<8x8xf32>
    %cst_32 = arith.constant dense<0.000000e+00> : vector<8xf32>
    %84 = vector.multi_reduction <add>, %83, %cst_32 [1] : vector<8x8xf32> to vector<8xf32>
    %85 = vector.shape_cast %84 : vector<8xf32> to vector<8x1xf32>
    %86 = tpu.reciprocal %85 {approx = true} : vector<8x1xf32> -> vector<8x1xf32>
    %87 = vector.broadcast %86 : vector<8x1xf32> to vector<8x8xf32>
    %88 = arith.mulf %83, %87 : vector<8x8xf32>
    %89 = arith.truncf %88 : vector<8x8xf32> to vector<8x8xbf16>
    %cst_33 = arith.constant dense<0.000000e+00> : vector<8x8xf32>
    %90 = tpu.matmul %89, %75, %cst_33 {dimension_numbers = #tpu.dot_dimension_numbers<[1], [0], [0], [1], [0, 0, 1, 1], [], []>} : vector<8x8xbf16>, vector<8x8xbf16>, vector<8x8xf32> -> vector<8x8xf32>
    %91 = arith.truncf %90 : vector<8x8xf32> to vector<8x8xbf16>
    %92 = vector.extract_strided_slice %16 {offsets = [16, 0], sizes = [8, 32], strides = [1, 1]} : vector<32x32xf32> to vector<8x32xf32>
    %93 = arith.truncf %92 : vector<8x32xf32> to vector<8x32xbf16>
    %cst_34 = arith.constant dense<0.000000e+00> : vector<8x32xf32>
    %94 = tpu.matmul %91, %93, %cst_34 {dimension_numbers = #tpu.dot_dimension_numbers<[1], [0], [0], [1], [0, 0, 1, 1], [], []>} : vector<8x8xbf16>, vector<8x32xbf16>, vector<8x32xf32> -> vector<8x32xf32>
    %95 = arith.addf %69, %94 : vector<8x32xf32>
    %96 = vector.extract_strided_slice %9 {offsets = [0, 24], sizes = [8, 8], strides = [1, 1]} : vector<8x32xf32> to vector<8x8xf32>
    %97 = arith.truncf %96 : vector<8x8xf32> to vector<8x8xbf16>
    %98 = vector.extract_strided_slice %15 {offsets = [0, 24], sizes = [8, 8], strides = [1, 1]} : vector<8x64xf32> to vector<8x8xf32>
    %99 = arith.truncf %98 : vector<8x8xf32> to vector<8x8xbf16>
    %100 = vector.extract_strided_slice %15 {offsets = [0, 56], sizes = [8, 8], strides = [1, 1]} : vector<8x64xf32> to vector<8x8xf32>
    %101 = arith.truncf %100 : vector<8x8xf32> to vector<8x8xbf16>
    "tpu.trace_start"() <{level = 10 : i32, message = "qd,kd->qk"}> : () -> ()
    %cst_35 = arith.constant dense<0.000000e+00> : vector<8x8xf32>
    %102 = tpu.matmul %97, %99, %cst_35 {dimension_numbers = #tpu.dot_dimension_numbers<[1], [1], [0], [0], [0, 0, 1, 0], [], []>} : vector<8x8xbf16>, vector<8x8xbf16>, vector<8x8xf32> -> vector<8x8xf32>
    "tpu.trace_stop"() : () -> ()
    %cst_36 = arith.constant 0.353553385 : f32
    %103 = vector.broadcast %cst_36 : f32 to vector<8x8xf32>
    %104 = arith.mulf %102, %103 : vector<8x8xf32>
    %cst_37 = arith.constant dense<0xFF800000> : vector<8xf32>
    %105 = vector.multi_reduction <maximumf>, %104, %cst_37 [1] : vector<8x8xf32> to vector<8xf32>
    %106 = vector.shape_cast %105 : vector<8xf32> to vector<8x1xf32>
    %107 = vector.broadcast %106 : vector<8x1xf32> to vector<8x8xf32>
    %108 = arith.subf %104, %107 : vector<8x8xf32>
    %109 = math.exp %108 : vector<8x8xf32>
    %cst_38 = arith.constant dense<0.000000e+00> : vector<8xf32>
    %110 = vector.multi_reduction <add>, %109, %cst_38 [1] : vector<8x8xf32> to vector<8xf32>
    %111 = vector.shape_cast %110 : vector<8xf32> to vector<8x1xf32>
    %112 = tpu.reciprocal %111 {approx = true} : vector<8x1xf32> -> vector<8x1xf32>
    %113 = vector.broadcast %112 : vector<8x1xf32> to vector<8x8xf32>
    %114 = arith.mulf %109, %113 : vector<8x8xf32>
    %115 = arith.truncf %114 : vector<8x8xf32> to vector<8x8xbf16>
    %cst_39 = arith.constant dense<0.000000e+00> : vector<8x8xf32>
    %116 = tpu.matmul %115, %101, %cst_39 {dimension_numbers = #tpu.dot_dimension_numbers<[1], [0], [0], [1], [0, 0, 1, 1], [], []>} : vector<8x8xbf16>, vector<8x8xbf16>, vector<8x8xf32> -> vector<8x8xf32>
    %117 = arith.truncf %116 : vector<8x8xf32> to vector<8x8xbf16>
    %118 = vector.extract_strided_slice %16 {offsets = [24, 0], sizes = [8, 32], strides = [1, 1]} : vector<32x32xf32> to vector<8x32xf32>
    %119 = arith.truncf %118 : vector<8x32xf32> to vector<8x32xbf16>
    %cst_40 = arith.constant dense<0.000000e+00> : vector<8x32xf32>
    %120 = tpu.matmul %117, %119, %cst_40 {dimension_numbers = #tpu.dot_dimension_numbers<[1], [0], [0], [1], [0, 0, 1, 1], [], []>} : vector<8x8xbf16>, vector<8x32xbf16>, vector<8x32xf32> -> vector<8x32xf32>
    %121 = arith.addf %95, %120 : vector<8x32xf32>
    %c0_41 = arith.constant 0 : index
    %c0_42 = arith.constant 0 : index
    %122 = vector.load %arg8[%c0_41, %c0_42] : memref<1x32xf32, #tpu.memory_space<vmem>>, vector<1x32xf32>
    %123 = vector.broadcast %122 : vector<1x32xf32> to vector<8x32xf32>
    %124 = arith.addf %121, %123 : vector<8x32xf32>
    %125 = arith.addf %124, %1 : vector<8x32xf32>
    %cst_43 = arith.constant dense<0.000000e+00> : vector<8xf32>
    %126 = vector.multi_reduction <add>, %125, %cst_43 [1] : vector<8x32xf32> to vector<8xf32>
    %127 = vector.shape_cast %126 : vector<8xf32> to vector<8x1xf32>
    %cst_44 = arith.constant 3.200000e+01 : f32
    %128 = vector.broadcast %cst_44 : f32 to vector<8x1xf32>
    %129 = arith.divf %127, %128 : vector<8x1xf32>
    %130 = vector.broadcast %129 : vector<8x1xf32> to vector<8x32xf32>
    %131 = arith.subf %125, %130 : vector<8x32xf32>
    %132 = arith.mulf %131, %131 : vector<8x32xf32>
    %cst_45 = arith.constant dense<0.000000e+00> : vector<8xf32>
    %133 = vector.multi_reduction <add>, %132, %cst_45 [1] : vector<8x32xf32> to vector<8xf32>
    %134 = vector.shape_cast %133 : vector<8xf32> to vector<8x1xf32>
    %cst_46 = arith.constant 3.200000e+01 : f32
    %135 = vector.broadcast %cst_46 : f32 to vector<8x1xf32>
    %136 = arith.divf %134, %135 : vector<8x1xf32>
    %137 = vector.broadcast %129 : vector<8x1xf32> to vector<8x32xf32>
    %138 = arith.subf %125, %137 : vector<8x32xf32>
    %cst_47 = arith.constant 9.99999974E-6 : f32
    %139 = vector.broadcast %cst_47 : f32 to vector<8x1xf32>
    %140 = arith.addf %136, %139 : vector<8x1xf32>
    %141 = math.rsqrt %140 : vector<8x1xf32>
    %142 = vector.broadcast %141 : vector<8x1xf32> to vector<8x32xf32>
    %143 = arith.mulf %138, %142 : vector<8x32xf32>
    %c0_48 = arith.constant 0 : index
    %c0_49 = arith.constant 0 : index
    %144 = vector.load %arg9[%c0_48, %c0_49] : memref<1x32xf32, #tpu.memory_space<vmem>>, vector<1x32xf32>
    %145 = vector.broadcast %144 : vector<1x32xf32> to vector<8x32xf32>
    %146 = arith.mulf %143, %145 : vector<8x32xf32>
    %c0_50 = arith.constant 0 : index
    %c0_51 = arith.constant 0 : index
    %147 = vector.load %arg10[%c0_50, %c0_51] : memref<1x32xf32, #tpu.memory_space<vmem>>, vector<1x32xf32>
    %148 = vector.broadcast %147 : vector<1x32xf32> to vector<8x32xf32>
    %149 = arith.addf %146, %148 : vector<8x32xf32>
    %c0_52 = arith.constant 0 : index
    %c0_53 = arith.constant 0 : index
    %c0_54 = arith.constant 0 : index
    %150 = vector.load %arg11[%c0_52, %c0_53, %c0_54] : memref<1x8x32xf32, #tpu.memory_space<vmem>>, vector<1x8x32xf32>
    %151 = vector.shape_cast %150 : vector<1x8x32xf32> to vector<8x32xf32>
    %152 = vector.shape_cast %149 : vector<8x32xf32> to vector<1x8x32xf32>
    tpu.vector_store %arg11[%c0_52, %c0_53, %c0_54], %152 {strides = array<i32>} : memref<1x8x32xf32, #tpu.memory_space<vmem>>, vector<1x8x32xf32>,
    return
  }
  func.func @transform_0(%arg0: i32) -> (i32, i32, i32) {
    %c0_i32 = arith.constant 0 : i32
    %c0_i32_0 = arith.constant 0 : i32
    %c0_i32_1 = arith.constant 0 : i32
    return %arg0, %c0_i32, %c0_i32_0 : i32, i32, i32
  }
  func.func @transform_1(%arg0: i32) -> (i32, i32, i32) {
    %c0_i32 = arith.constant 0 : i32
    %c0_i32_0 = arith.constant 0 : i32
    %c0_i32_1 = arith.constant 0 : i32
    return %arg0, %c0_i32, %c0_i32_0 : i32, i32, i32
  }
  func.func @transform_2(%arg0: i32) -> (i32, i32) {
    %c0_i32 = arith.constant 0 : i32
    %c0_i32_0 = arith.constant 0 : i32
    %c0_i32_1 = arith.constant 0 : i32
    return %c0_i32, %c0_i32_0 : i32, i32
  }
  func.func @transform_3(%arg0: i32) -> (i32, i32) {
    %c0_i32 = arith.constant 0 : i32
    %c0_i32_0 = arith.constant 0 : i32
    %c0_i32_1 = arith.constant 0 : i32
    return %c0_i32, %c0_i32_0 : i32, i32
  }
  func.func @transform_4(%arg0: i32) -> (i32, i32) {
    %c0_i32 = arith.constant 0 : i32
    %c0_i32_0 = arith.constant 0 : i32
    %c0_i32_1 = arith.constant 0 : i32
    return %c0_i32, %c0_i32_0 : i32, i32
  }
  func.func @transform_5(%arg0: i32) -> (i32, i32) {
    %c0_i32 = arith.constant 0 : i32
    %c0_i32_0 = arith.constant 0 : i32
    %c0_i32_1 = arith.constant 0 : i32
    return %c0_i32, %c0_i32_0 : i32, i32
  }
  func.func @transform_6(%arg0: i32) -> (i32, i32) {
    %c0_i32 = arith.constant 0 : i32
    %c0_i32_0 = arith.constant 0 : i32
    %c0_i32_1 = arith.constant 0 : i32
    return %c0_i32, %c0_i32_0 : i32, i32
  }
  func.func @transform_7(%arg0: i32) -> (i32, i32) {
    %c0_i32 = arith.constant 0 : i32
    %c0_i32_0 = arith.constant 0 : i32
    %c0_i32_1 = arith.constant 0 : i32
    return %c0_i32, %c0_i32_0 : i32, i32
  }
  func.func @transform_8(%arg0: i32) -> (i32, i32) {
    %c0_i32 = arith.constant 0 : i32
    %c0_i32_0 = arith.constant 0 : i32
    %c0_i32_1 = arith.constant 0 : i32
    return %c0_i32, %c0_i32_0 : i32, i32
  }
  func.func @transform_9(%arg0: i32) -> (i32, i32) {
    %c0_i32 = arith.constant 0 : i32
    %c0_i32_0 = arith.constant 0 : i32
    %c0_i32_1 = arith.constant 0 : i32
    return %c0_i32, %c0_i32_0 : i32, i32
  }
  func.func @transform_10(%arg0: i32) -> (i32, i32, i32) {
    %c0_i32 = arith.constant 0 : i32
    %c0_i32_0 = arith.constant 0 : i32
    %c0_i32_1 = arith.constant 0 : i32
    return %arg0, %c0_i32, %c0_i32_0 : i32, i32, i32
  }
}

module attributes {stable_mosaic.version = 11 : i64} {
  func.func @_ffn_block_kernel(%arg0: memref<16x32xf32, #tpu.memory_space<vmem>>, %arg1: memref<32x128xbf16, #tpu.memory_space<vmem>>, %arg2: memref<1x128xf32, #tpu.memory_space<vmem>>, %arg3: memref<128x32xbf16, #tpu.memory_space<vmem>>, %arg4: memref<1x32xf32, #tpu.memory_space<vmem>>, %arg5: memref<1x32xf32, #tpu.memory_space<vmem>>, %arg6: memref<1x32xf32, #tpu.memory_space<vmem>>, %arg7: memref<16x32xf32, #tpu.memory_space<vmem>>) attributes {dimension_semantics = [], scalar_prefetch = 0 : i64, scratch_operands = 0 : i64, tpu.core_type = #tpu.core_type<tc>} {
    %c0 = arith.constant 0 : index
    %c0_0 = arith.constant 0 : index
    %0 = vector.load %arg0[%c0, %c0_0] : memref<16x32xf32, #tpu.memory_space<vmem>>, vector<16x32xf32>
    %1 = arith.truncf %0 : vector<16x32xf32> to vector<16x32xbf16>
    %c0_1 = arith.constant 0 : index
    %c0_2 = arith.constant 0 : index
    %2 = vector.load %arg1[%c0_1, %c0_2] : memref<32x128xbf16, #tpu.memory_space<vmem>>, vector<32x128xbf16>
    %cst = arith.constant dense<0.000000e+00> : vector<16x128xf32>
    %3 = tpu.matmul %1, %2, %cst {dimension_numbers = #tpu.dot_dimension_numbers<[1], [0], [0], [1], [0, 0, 1, 1], [], []>} : vector<16x32xbf16>, vector<32x128xbf16>, vector<16x128xf32> -> vector<16x128xf32>
    %c0_3 = arith.constant 0 : index
    %c0_4 = arith.constant 0 : index
    %4 = vector.load %arg2[%c0_3, %c0_4] : memref<1x128xf32, #tpu.memory_space<vmem>>, vector<1x128xf32>
    %5 = vector.broadcast %4 : vector<1x128xf32> to vector<16x128xf32>
    %6 = arith.addf %3, %5 : vector<16x128xf32>
    %cst_5 = arith.constant 0.000000e+00 : f32
    %7 = vector.broadcast %cst_5 : f32 to vector<16x128xf32>
    %8 = arith.maximumf %6, %7 : vector<16x128xf32>
    %9 = arith.truncf %8 : vector<16x128xf32> to vector<16x128xbf16>
    %c0_6 = arith.constant 0 : index
    %c0_7 = arith.constant 0 : index
    %10 = vector.load %arg3[%c0_6, %c0_7] : memref<128x32xbf16, #tpu.memory_space<vmem>>, vector<128x32xbf16>
    %cst_8 = arith.constant dense<0.000000e+00> : vector<16x32xf32>
    %11 = tpu.matmul %9, %10, %cst_8 {dimension_numbers = #tpu.dot_dimension_numbers<[1], [0], [0], [1], [0, 0, 1, 1], [], []>} : vector<16x128xbf16>, vector<128x32xbf16>, vector<16x32xf32> -> vector<16x32xf32>
    %c0_9 = arith.constant 0 : index
    %c0_10 = arith.constant 0 : index
    %12 = vector.load %arg4[%c0_9, %c0_10] : memref<1x32xf32, #tpu.memory_space<vmem>>, vector<1x32xf32>
    %13 = vector.broadcast %12 : vector<1x32xf32> to vector<16x32xf32>
    %14 = arith.addf %11, %13 : vector<16x32xf32>
    %15 = arith.addf %14, %0 : vector<16x32xf32>
    %cst_11 = arith.constant dense<0.000000e+00> : vector<16xf32>
    %16 = vector.multi_reduction <add>, %15, %cst_11 [1] : vector<16x32xf32> to vector<16xf32>
    %17 = vector.shape_cast %16 : vector<16xf32> to vector<16x1xf32>
    %cst_12 = arith.constant 3.200000e+01 : f32
    %18 = vector.broadcast %cst_12 : f32 to vector<16x1xf32>
    %19 = arith.divf %17, %18 : vector<16x1xf32>
    %20 = vector.broadcast %19 : vector<16x1xf32> to vector<16x32xf32>
    %21 = arith.subf %15, %20 : vector<16x32xf32>
    %22 = arith.mulf %21, %21 : vector<16x32xf32>
    %cst_13 = arith.constant dense<0.000000e+00> : vector<16xf32>
    %23 = vector.multi_reduction <add>, %22, %cst_13 [1] : vector<16x32xf32> to vector<16xf32>
    %24 = vector.shape_cast %23 : vector<16xf32> to vector<16x1xf32>
    %cst_14 = arith.constant 3.200000e+01 : f32
    %25 = vector.broadcast %cst_14 : f32 to vector<16x1xf32>
    %26 = arith.divf %24, %25 : vector<16x1xf32>
    %27 = vector.broadcast %19 : vector<16x1xf32> to vector<16x32xf32>
    %28 = arith.subf %15, %27 : vector<16x32xf32>
    %cst_15 = arith.constant 9.99999974E-6 : f32
    %29 = vector.broadcast %cst_15 : f32 to vector<16x1xf32>
    %30 = arith.addf %26, %29 : vector<16x1xf32>
    %31 = math.rsqrt %30 : vector<16x1xf32>
    %32 = vector.broadcast %31 : vector<16x1xf32> to vector<16x32xf32>
    %33 = arith.mulf %28, %32 : vector<16x32xf32>
    %c0_16 = arith.constant 0 : index
    %c0_17 = arith.constant 0 : index
    %34 = vector.load %arg5[%c0_16, %c0_17] : memref<1x32xf32, #tpu.memory_space<vmem>>, vector<1x32xf32>
    %35 = vector.broadcast %34 : vector<1x32xf32> to vector<16x32xf32>
    %36 = arith.mulf %33, %35 : vector<16x32xf32>
    %c0_18 = arith.constant 0 : index
    %c0_19 = arith.constant 0 : index
    %37 = vector.load %arg6[%c0_18, %c0_19] : memref<1x32xf32, #tpu.memory_space<vmem>>, vector<1x32xf32>
    %38 = vector.broadcast %37 : vector<1x32xf32> to vector<16x32xf32>
    %39 = arith.addf %36, %38 : vector<16x32xf32>
    %c0_20 = arith.constant 0 : index
    %c0_21 = arith.constant 0 : index
    %40 = vector.load %arg7[%c0_20, %c0_21] : memref<16x32xf32, #tpu.memory_space<vmem>>, vector<16x32xf32>
    tpu.vector_store %arg7[%c0_20, %c0_21], %39 {strides = array<i32>} : memref<16x32xf32, #tpu.memory_space<vmem>>, vector<16x32xf32>,
    return
  }
}

module attributes {stable_mosaic.version = 11 : i64} {
  func.func @_ffn_block_kernel(%arg0: memref<16x32xf32, #tpu.memory_space<vmem>>, %arg1: memref<32x128xbf16, #tpu.memory_space<vmem>>, %arg2: memref<1x128xf32, #tpu.memory_space<vmem>>, %arg3: memref<128x32xbf16, #tpu.memory_space<vmem>>, %arg4: memref<1x32xf32, #tpu.memory_space<vmem>>, %arg5: memref<1x32xf32, #tpu.memory_space<vmem>>, %arg6: memref<1x32xf32, #tpu.memory_space<vmem>>, %arg7: memref<16x32xf32, #tpu.memory_space<vmem>>) attributes {dimension_semantics = [], scalar_prefetch = 0 : i64, scratch_operands = 0 : i64, tpu.core_type = #tpu.core_type<tc>} {
    %c0 = arith.constant 0 : index
    %c0_0 = arith.constant 0 : index
    %0 = vector.load %arg0[%c0, %c0_0] : memref<16x32xf32, #tpu.memory_space<vmem>>, vector<16x32xf32>
    %1 = arith.truncf %0 : vector<16x32xf32> to vector<16x32xbf16>
    %c0_1 = arith.constant 0 : index
    %c0_2 = arith.constant 0 : index
    %2 = vector.load %arg1[%c0_1, %c0_2] : memref<32x128xbf16, #tpu.memory_space<vmem>>, vector<32x128xbf16>
    %cst = arith.constant dense<0.000000e+00> : vector<16x128xf32>
    %3 = tpu.matmul %1, %2, %cst {dimension_numbers = #tpu.dot_dimension_numbers<[1], [0], [0], [1], [0, 0, 1, 1], [], []>} : vector<16x32xbf16>, vector<32x128xbf16>, vector<16x128xf32> -> vector<16x128xf32>
    %c0_3 = arith.constant 0 : index
    %c0_4 = arith.constant 0 : index
    %4 = vector.load %arg2[%c0_3, %c0_4] : memref<1x128xf32, #tpu.memory_space<vmem>>, vector<1x128xf32>
    %5 = vector.broadcast %4 : vector<1x128xf32> to vector<16x128xf32>
    %6 = arith.addf %3, %5 : vector<16x128xf32>
    %cst_5 = arith.constant 0.000000e+00 : f32
    %7 = vector.broadcast %cst_5 : f32 to vector<16x128xf32>
    %8 = arith.maximumf %6, %7 : vector<16x128xf32>
    %9 = arith.truncf %8 : vector<16x128xf32> to vector<16x128xbf16>
    %c0_6 = arith.constant 0 : index
    %c0_7 = arith.constant 0 : index
    %10 = vector.load %arg3[%c0_6, %c0_7] : memref<128x32xbf16, #tpu.memory_space<vmem>>, vector<128x32xbf16>
    %cst_8 = arith.constant dense<0.000000e+00> : vector<16x32xf32>
    %11 = tpu.matmul %9, %10, %cst_8 {dimension_numbers = #tpu.dot_dimension_numbers<[1], [0], [0], [1], [0, 0, 1, 1], [], []>} : vector<16x128xbf16>, vector<128x32xbf16>, vector<16x32xf32> -> vector<16x32xf32>
    %c0_9 = arith.constant 0 : index
    %c0_10 = arith.constant 0 : index
    %12 = vector.load %arg4[%c0_9, %c0_10] : memref<1x32xf32, #tpu.memory_space<vmem>>, vector<1x32xf32>
    %13 = vector.broadcast %12 : vector<1x32xf32> to vector<16x32xf32>
    %14 = arith.addf %11, %13 : vector<16x32xf32>
    %15 = arith.addf %14, %0 : vector<16x32xf32>
    %cst_11 = arith.constant dense<0.000000e+00> : vector<16xf32>
    %16 = vector.multi_reduction <add>, %15, %cst_11 [1] : vector<16x32xf32> to vector<16xf32>
    %17 = vector.shape_cast %16 : vector<16xf32> to vector<16x1xf32>
    %cst_12 = arith.constant 3.200000e+01 : f32
    %18 = vector.broadcast %cst_12 : f32 to vector<16x1xf32>
    %19 = arith.divf %17, %18 : vector<16x1xf32>
    %20 = vector.broadcast %19 : vector<16x1xf32> to vector<16x32xf32>
    %21 = arith.subf %15, %20 : vector<16x32xf32>
    %22 = arith.mulf %21, %21 : vector<16x32xf32>
    %cst_13 = arith.constant dense<0.000000e+00> : vector<16xf32>
    %23 = vector.multi_reduction <add>, %22, %cst_13 [1] : vector<16x32xf32> to vector<16xf32>
    %24 = vector.shape_cast %23 : vector<16xf32> to vector<16x1xf32>
    %cst_14 = arith.constant 3.200000e+01 : f32
    %25 = vector.broadcast %cst_14 : f32 to vector<16x1xf32>
    %26 = arith.divf %24, %25 : vector<16x1xf32>
    %27 = vector.broadcast %19 : vector<16x1xf32> to vector<16x32xf32>
    %28 = arith.subf %15, %27 : vector<16x32xf32>
    %cst_15 = arith.constant 9.99999974E-6 : f32
    %29 = vector.broadcast %cst_15 : f32 to vector<16x1xf32>
    %30 = arith.addf %26, %29 : vector<16x1xf32>
    %31 = math.rsqrt %30 : vector<16x1xf32>
    %32 = vector.broadcast %31 : vector<16x1xf32> to vector<16x32xf32>
    %33 = arith.mulf %28, %32 : vector<16x32xf32>
    %c0_16 = arith.constant 0 : index
    %c0_17 = arith.constant 0 : index
    %34 = vector.load %arg5[%c0_16, %c0_17] : memref<1x32xf32, #tpu.memory_space<vmem>>, vector<1x32xf32>
    %35 = vector.broadcast %34 : vector<1x32xf32> to vector<16x32xf32>
    %36 = arith.mulf %33, %35 : vector<16x32xf32>
    %c0_18 = arith.constant 0 : index
    %c0_19 = arith.constant 0 : index
    %37 = vector.load %arg6[%c0_18, %c0_19] : memref<1x32xf32, #tpu.memory_space<vmem>>, vector<1x32xf32>
    %38 = vector.broadcast %37 : vector<1x32xf32> to vector<16x32xf32>
    %39 = arith.addf %36, %38 : vector<16x32xf32>
    %c0_20 = arith.constant 0 : index
    %c0_21 = arith.constant 0 : index
    %40 = vector.load %arg7[%c0_20, %c0_21] : memref<16x32xf32, #tpu.memory_space<vmem>>, vector<16x32xf32>
    tpu.vector_store %arg7[%c0_20, %c0_21], %39 {strides = array<i32>} : memref<16x32xf32, #tpu.memory_space<vmem>>, vector<16x32xf32>,
    return
  }
}

</mosaic_0001>

<bundles_post_ra>
// kernel: _lambda_.7
= control target key start
LH: loop header
LB: loop body
LE: loop exit
PB: predicated region body
PF: predicated region fallthrough
CT: control target
= control target key end

     0   :  { %s219_s9 = smov 0   ;;  %s247_s0 = inlined_call_operand.vmem [shape: f32[2,8,32], index: 0, kind: input, shape index: {}]   ;;  %s248_s1 = inlined_call_operand.vmem [shape: f32[8,32], index: 1, kind: input, shape index: {}]   ;;  %s249_s2 = inlined_call_operand.vmem [shape: f32[2,8,32], index: 2, kind: output, shape index: {}]  }
   0x1 LB: > { %s198_s10 = sadd.s32 4294967295, %s221_s9   ;;  %p202_p0 = scmp.ge.s32.totalorder %s221_s9, 1  ;;  %s221_s9 = sphi %s219_s9, %s12_s9  }
   0x2   : > { %p111_p1 = scmp.lt.s32.totalorder %s221_s9, 3 }
   0x4   : > { %p112_p2 = pnand %p202_p0, %p111_p1 }
   0x5   : > { %p131_p3 = scmp.lt.s32.totalorder (!%p112_p2), %s198_s10, 1  ;;  %v141_v1 = vld [vmem:[%s248_s1] sm:$0xff] (!%p112_p2)  ;;  %vm143_vm0 = vcmask (!%p112_p2), 261120  }
   0x6   : > { %115 = sbr.rel (%p112_p2) target bundleno = 22 (0x16), region = 28 }
   0xd   : > { %s251_s10 = smov (!%p131_p3, %s198_s10), 1 }
   0xe   : > { %s203_s11 = sshll.u32 %s251_s10, 3 }
   0xf   : > { %s134_s14 = scalar_lea.vmem %s247_s0, %s203_s11  ;;  %s138_s19 = scalar_lea.vmem %s249_s2, %s203_s11 }
  0x10   : > { %v139_v0 = vld [vmem:[%s134_s14] sm:$0xff] }
  0x11   : > { %v140_v2 = vmul.f32 5.656854, %v139_v0 }
  0x13   : > { %v142_v3 = vadd.f32 %v141_v1, %v140_v2 }
  0x15   : > { %144 = vst.msk [vmem:[%s138_s19] sm:$0xff] %vm143_vm0, %v142_v3 }
  0x16 PF: > { %s12_s9 = sadd.s32 1, %s221_s9  }
  0x17   : > { %p9_p4 = scmp.ge.s32.totalorder %s12_s9, 4  }
  0x19   :  { %11 = sbr.rel (!%p9_p4) target bundleno = 1 (0x1), region = 58 }

// kernel: _lambda_.10
= control target key start
LH: loop header
LB: loop body
LE: loop exit
PB: predicated region body
PF: predicated region fallthrough
CT: control target
= control target key end

     0   :  { %v337_v0 = vmov 0.0   ;;  %vm338_vm0 = vmmov 0   ;;  %vm53_vm1 = vcmask 261120   ;;  %s440_s1 = inlined_call_operand.vmem [shape: bf16[32,128], index: 1, kind: input, shape index: {}]   ;;  %s441_s0 = inlined_call_operand.vmem [shape: f32[16,32], index: 0, kind: input, shape index: {}]   ;;  %s442_s3 = inlined_call_operand.vmem [shape: bf16[128,32], index: 3, kind: input, shape index: {}]   ;;  %s443_s2 = inlined_call_operand.vmem [shape: f32[1,128], index: 2, kind: input, shape index: {}]   ;;  %s444_s4 = inlined_call_operand.vmem [shape: f32[1,32], index: 4, kind: input, shape index: {}]   ;;  %s445_s5 = inlined_call_operand.vmem [shape: f32[1,32], index: 5, kind: input, shape index: {}]   ;;  %s446_s6 = inlined_call_operand.vmem [shape: f32[1,32], index: 6, kind: input, shape index: {}]   ;;  %s447_s7 = inlined_call_operand.vmem [shape: f32[16,32], index: 7, kind: output, shape index: {}]  }
   0x1   :  { %293 = vmatprep.subr.bf16.mxu0 %v337_v0  ;;  %v323_v1 = vld [vmem:[%s440_s1] sm:$0xff]   ;;  %297 = vmatprep.mubr.msk.bf16.mxu0 %vm338_vm0, %v337_v0  ;;  %v324_v2 = vld [vmem:[%s440_s1 + $0x8] sm:$0xff]   ;;  %v327_v8 = vld [vmem:[%s442_s3 + $0x10] sm:$0xff]  }
   0x2   :  { %301 = vmatprep.subr.bf16.mxu1 %v337_v0  ;;  %317 = vmatprep.mubr.msk.bf16.mxu1 %vm338_vm0, %v337_v0  ;;  %v27_v3 = vld [vmem:[%s441_s0] sm:$0xff]  ;;  %v28_v4 = vld [vmem:[%s441_s0 + $0x8] sm:$0xff]  ;;  %v328_v9 = vld [vmem:[%s442_s3 + $0x18] sm:$0xff]  }
   0x3   :  { %294 = vmatpush3.bf16.msra.mxu0 %v323_v1  ;;  %v325_v5 = vld [vmem:[%s442_s3] sm:$0xff]   ;;  %v29_v6 = vpack.c.bf16 %v28_v4, %v27_v3  ;;  %v326_v7 = vld [vmem:[%s442_s3 + $0x8] sm:$0xff]   ;;  %v331_v12 = vld [vmem:[%s442_s3 + $0x30] sm:$0xff]  }
   0x4   :  { %295 = vmatprep.subr.bf16.mxu0 %v337_v0  ;;  %302 = vmatpush3.bf16.msra.mxu1 %v325_v5  ;;  %v329_v10 = vld [vmem:[%s442_s3 + $0x20] sm:$0xff]   ;;  %v330_v11 = vld [vmem:[%s442_s3 + $0x28] sm:$0xff]   ;;  %v332_v13 = vld [vmem:[%s442_s3 + $0x38] sm:$0xff]  }
   0x5   :  { %303 = vmatprep.subr.bf16.mxu1 %v337_v0  ;;  %v266_v14 = vld [vmem:[%s443_s2] ss:$0 sm:$0xff] }
   0x6   :  { %v270_v24 = vld [vmem:[%s444_s4] ss:$0 sm:$0xff] }
   0x7   :  { %296 = vmatpush3.bf16.msra.mxu0 %v324_v2  ;;  %v279_v52 = vld [vmem:[%s445_s5] ss:$0 sm:$0xff] }
   0x8   :  { %304 = vmatpush3.bf16.msra.mxu1 %v326_v7  ;;  %v280_v54 = vld [vmem:[%s446_s6] ss:$0 sm:$0xff] }
   0x9   :  { %305 = vmatprep.subr.bf16.mxu1 %v337_v0 }
   0xa   :  { %298 = vmatmul.mubr.msk.bf16.vlgmr.msra.gmra.mrb[0].mxu0 %vm53_vm1, %v29_v6 }
   0xc   :  { %306 = vmatpush3.bf16.msra.mxu1 %v327_v8 }
   0xd   :  { %307 = vmatprep.subr.bf16.mxu1 %v337_v0 }
  0x10   :  { %308 = vmatpush3.bf16.msra.mxu1 %v328_v9 }
  0x11   :  { %309 = vmatprep.subr.bf16.mxu1 %v337_v0 }
  0x14   :  { %310 = vmatpush3.bf16.msra.mxu1 %v329_v10 }
  0x15   :  { %311 = vmatprep.subr.bf16.mxu1 %v337_v0 }
  0x18   :  { %312 = vmatpush3.bf16.msra.mxu1 %v330_v11 }
  0x19   :  { %313 = vmatprep.subr.bf16.mxu1 %v337_v0 }
  0x1c   :  { %314 = vmatpush3.bf16.msra.mxu1 %v331_v12 }
  0x1d   :  { %315 = vmatprep.subr.bf16.mxu1 %v337_v0 }
  0x20   :  { %316 = vmatpush3.bf16.msra.mxu1 %v332_v13 }
  0xdd   :  { %v91_v15 = vpop.f32.mrb[0].mxu0 }
  0xde   :  { %v92_v16 = vadd.f32 %v266_v14, %v91_v15  ;;  %v299_v17 = vpop.f32.mrb[1].mxu0 }
  0xdf   :  { %v94_v18 = vpop.f32.mrb[2].mxu0 }
  0xe0   :  { %v95_v19 = vadd.f32 %v266_v14, %v94_v18  ;;  %v300_v20 = vpop.f32.mrb[3].mxu0  ;;  %v98_v21 = vmax.f32 %v92_v16, 0.0 }
  0xe2   :  { %v99_v22 = vmax.f32 %v95_v19, 0.0 }
  0xe4   :  { %v100_v23 = vpack.c.bf16 %v99_v22, %v98_v21 }
  0xe6   :  { %318 = vmatmul.mubr.bf16.vlgmr.msra.gmra.mrb[0].mxu1 %v100_v23 }
 0x1b9   :  { %v206_v25 = vpop.f32.mrb[0].mxu1 }
 0x1ba   :  { %v207_v26 = vadd.f32 %v270_v24, %v206_v25  ;;  %v319_v27 = vpop.f32.mrb[1].mxu1 }
 0x1bb   :  { %v209_v28 = vpop.f32.mrb[2].mxu1 }
 0x1bc   :  { %v210_v29 = vadd.f32 %v270_v24, %v209_v28  ;;  %v320_v30 = vpop.f32.mrb[3].mxu1  ;;  %v213_v31 = vadd.f32 %v207_v26, %v27_v3 }
 0x1be   :  { %v215_v32 = vsel %vm53_vm1, %v213_v31, 0.0  ;;  %v214_v33 = vadd.f32 %v210_v29, %v28_v4 }
 0x1bf   :  { %216 = vadd.xlane.f32.xlu0 %v215_v32 }
 0x1c0   :  { %v218_v34 = vsel %vm53_vm1, %v214_v33, 0.0 }
 0x1c3   :  { %219 = vadd.xlane.f32.xlu0 %v218_v34 }
 0x24c   :  { %v217_v35 = vpop.xlane.xlu0 %216 }
 0x24d   :  { %v222_v36 = vmul.f32 0.03125, %v217_v35 }
 0x24f   :  { %v224_v37 = vsub.f32 %v213_v31, %v222_v36 }
 0x250   :  { %v220_v38 = vpop.xlane.xlu0 %219 }
 0x251   :  { %v223_v39 = vmul.f32 0.03125, %v220_v38  ;;  %v226_v40 = vmul.f32 %v224_v37, %v224_v37 }
 0x253   :  { %v225_v41 = vsub.f32 %v214_v33, %v223_v39  ;;  %v228_v42 = vsel %vm53_vm1, %v226_v40, 0.0 }
 0x254   :  { %229 = vadd.xlane.f32.xlu1 %v228_v42 }
 0x255   :  { %v227_v43 = vmul.f32 %v225_v41, %v225_v41 }
 0x257   :  { %v231_v44 = vsel %vm53_vm1, %v227_v43, 0.0 }
 0x258   :  { %232 = vadd.xlane.f32.xlu1 %v231_v44 }
 0x2e1   :  { %v230_v45 = vpop.xlane.xlu1 %229 }
 0x2e2   :  { %v234_v46 = vmul.f32 0.03125, %v230_v45 }
 0x2e4   :  { %v236_v47 = vadd.f32 1e-05, %v234_v46 }
 0x2e5   :  { %v233_v48 = vpop.xlane.xlu1 %232 }
 0x2e6   :  { %333 = vrsqrt.f32 %v236_v47  ;;  %v235_v49 = vmul.f32 0.03125, %v233_v48 }
 0x2e8   :  { %v237_v50 = vadd.f32 1e-05, %v235_v49 }
 0x2ea   :  { %335 = vrsqrt.f32 %v237_v50 }
 0x2f0   :  { %v334_v51 = vpop.eup %333 }
 0x2f1   :  { %v240_v53 = vmul.f32 %v334_v51, %v224_v37 }
 0x2f3   :  { %v249_v55 = vmul.f32 %v279_v52, %v240_v53 }
 0x2f4   :  { %v336_v56 = vpop.eup %335 }
 0x2f5   :  { %v258_v57 = vadd.f32 %v280_v54, %v249_v55  ;;  %v241_v58 = vmul.f32 %v336_v56, %v225_v41 }
 0x2f7   :  { %260 = vst.msk [vmem:[%s447_s7] sm:$0xff] %vm53_vm1, %v258_v57  ;;  %v250_v59 = vmul.f32 %v279_v52, %v241_v58 }
 0x2f9   :  { %v259_v60 = vadd.f32 %v280_v54, %v250_v59 }
 0x2fb   :  { %261 = vst.msk [vmem:[%s447_s7 + $0x8] sm:$0xff] %vm53_vm1, %v259_v60 }

// kernel: _lambda_.8
= control target key start
LH: loop header
LB: loop body
LE: loop exit
PB: predicated region body
PF: predicated region fallthrough
CT: control target
= control target key end

     0   :  { %s1385_s27 = smov 0   ;;  %s1544_s0 = inlined_call_operand.vmem [shape: f32[2,8,32], index: 0, kind: input, shape index: {}]   ;;  %s1545_s1 = inlined_call_operand.vmem [shape: f32[2,8,8], index: 1, kind: input, shape index: {}]   ;;  %s1546_s2 = inlined_call_operand.vmem [shape: bf16[32,96], index: 2, kind: input, shape index: {}]   ;;  %s1547_s3 = inlined_call_operand.vmem [shape: f32[1,96], index: 3, kind: input, shape index: {}]   ;;  %s1548_s4 = inlined_call_operand.vmem [shape: f32[32,32], index: 4, kind: input, shape index: {}]   ;;  %s1549_s5 = inlined_call_operand.vmem [shape: f32[1,32], index: 5, kind: input, shape index: {}]   ;;  %s1550_s6 = inlined_call_operand.vmem [shape: f32[1,32], index: 6, kind: input, shape index: {}]   ;;  %s1551_s7 = inlined_call_operand.vmem [shape: f32[1,32], index: 7, kind: input, shape index: {}]   ;;  %s1552_s8 = inlined_call_operand.vmem [shape: f32[2,8,32], index: 8, kind: output, shape index: {}]  }
   0x1 LB: > { %s1142_s28 = sadd.s32 4294967295, %s1325_s27   ;;  %p1146_p0 = scmp.ge.s32.totalorder %s1325_s27, 1  ;;  %s1325_s27 = sphi %s1385_s27, %s18_s27  }
   0x2   : > { %p270_p1 = scmp.lt.s32.totalorder %s1325_s27, 3 }
   0x4   : > { %p271_p2 = pnand %p1146_p0, %p270_p1 }
   0x5   : > { %v1299_v0 = vld [vmem:[%s1546_s2] sm:$0xff] (!%p271_p2)   ;;  %v1327_v1 = vmov (!%p271_p2), 0.0   ;;  %v1300_v2 = vld [vmem:[%s1546_s2 + $0x8] sm:$0xff] (!%p271_p2)   ;;  %vm1328_vm0 = vmmov (!%p271_p2), 0   ;;  %p306_p3 = scmp.lt.s32.totalorder (!%p271_p2), %s1142_s28, 1  ;;  %vm344_vm1 = vcmask (!%p271_p2), 261120  }
   0x6   : > { %274 = sbr.rel (%p271_p2) target bundleno = 2938 (0xb7a), region = 52  ;;  %1198 = vmatprep.subr.bf16.mxu0 (!%p271_p2), %v1327_v1  ;;  %1206 = vmatprep.subr.bf16.mxu1 (!%p271_p2), %v1327_v1  ;;  %v1150_v5 = vld [vmem:[%s1547_s3] ss:$0 sm:$0xff] (!%p271_p2)  ;;  %s1329_s17 = smov (!%p271_p2), 120   ;;  %vm397_vm2 = vcmask (!%p271_p2), 64512   ;;  %vm463_vm3 = vcmask (!%p271_p2), 1043456  }
   0x7   : > { %1199 = vmatpush3.bf16.msra.mxu0 (!%p271_p2), %v1299_v0  ;;  %1202 = vmatprep.mubr.msk.bf16.mxu0 (!%p271_p2), %vm1328_vm0, %v1327_v1  ;;  %s1330_s18 = smov (!%p271_p2), 96   ;;  %s1331_s19 = smov (!%p271_p2), 88   ;;  %v389_v54 = vld [vmem:[%s1548_s4] sm:$0xff] (!%p271_p2)  ;;  %v390_v56 = vld [vmem:[%s1548_s4 + $0x8] sm:$0xff] (!%p271_p2) }
   0x8   : > { %1200 = vmatprep.subr.bf16.mxu0 (!%p271_p2), %v1327_v1  ;;  %1208 = vmatprep.mubr.msk.bf16.mxu1 (!%p271_p2), %vm1328_vm0, %v1327_v1  ;;  %s1332_s23 = smov (!%p271_p2), 64   ;;  %s1333_s24 = smov (!%p271_p2), 56   ;;  %v508_v55 = vpack.c.bf16 (!%p271_p2), %v389_v54, %v389_v54  ;;  %v622_v58 = vpack.c.bf16 (!%p271_p2), %v390_v56, %v390_v56 }
   0x9   : > { %s1334_s25 = smov (!%p271_p2), 112   ;;  %s1335_s26 = smov (!%p271_p2), 80  }
   0xa   : > { %v673_v57 = vsel (!%p271_p2), %vm463_vm3, %v508_v55, 0  ;;  %v627_v59 = vsel (!%p271_p2), %vm463_vm3, %v622_v58, 0  ;;  %s1336_s10 = smov (!%p271_p2), 72   ;;  %s1337_s12 = smov (!%p271_p2), 104  }
   0xb   : > { %1201 = vmatpush3.bf16.msra.mxu0 (!%p271_p2), %v1300_v2  ;;  %s1338_s13 = smov (!%p271_p2), 48   ;;  %s1339_s16 = smov (!%p271_p2), 40  }
   0xc   : > { %1212 = vmatprep.subr.bf16.mxu0 (!%p271_p2), %v1327_v1 }
   0xd   : > { %s1554_s28 = smov (!%p306_p3, %s1142_s28), 1 }
   0xe   : > { %s1406_s11 = sshll.u32 %s1554_s28, 3 }
   0xf   : > { %s309_s14 = scalar_lea.vmem %s1544_s0, %s1406_s11  ;;  %s313_s22 = scalar_lea.vmem %s1545_s1, %s1406_s11 }
  0x10   : > { %v1413_v3 = vld [vmem:[%s309_s14] sm:$0xff]  ;;  %s317_s28 = scalar_lea.vmem %s1552_s8, %s1406_s11 }
  0x11   : > { %v320_v4 = vpack.c.bf16 %v1413_v3, %v1413_v3  ;;  %v1443_v18 = vld [vmem:[%s313_s22] sm:$0xff] }
  0x13   : > { %1203 = vmatmul.mubr.msk.bf16.vlgmr.msra.gmra.mrb[0].mxu0 %vm344_vm1, %v320_v4 }
  0x14   : > { %1214 = vmatprep.mubr.msk.bf16.mxu0 %vm1328_vm0, %v1327_v1 }
  0xe6   : > { %v382_v6 = vpop.f32.mrb[0].mxu0 }
  0xe7   : > { %v383_v7 = vadd.f32 %v1150_v5, %v382_v6  ;;  %v1204_v8 = vpop.f32.mrb[1].mxu0 }
  0xe8   : > { %v385_v9 = vpop.f32.mrb[2].mxu0 }
  0xe9   : > { %v1423_v10 = vpack.c.bf16 %v383_v7, %v383_v7  ;;  %v1205_v11 = vpop.f32.mrb[3].mxu0 }
  0xeb   : > { %509 = vrot.lane.b32.xlu1 %v1423_v10, %s1329_s17  ;;  %395 = vrot.lane.b32.xlu0 %v1423_v10, %s1330_s18 }
  0xef   : > { %511 = vrot.lane.b32.xlu0 %v1423_v10, %s1331_s19 }
 0x15d   : > { %v396_v12 = vpop.permute.xlu0 %395  ;;  %v510_v16 = vpop.permute.xlu1 %509 }
 0x15e   : > { %v402_v13 = vsel %vm397_vm2, %v396_v12, 0 }
 0x15f   : > { %1207 = vmatpush3.bf16.xpose.msra.mxu1 %v402_v13 }
 0x160   : > { %1218 = vmatprep.subr.bf16.mxu1 %v1327_v1 }
 0x161   : > { %v512_v14 = vpop.permute.xlu0 %511 }
 0x162   : > { %v517_v15 = vsel %vm397_vm2, %v512_v14, 0 }
 0x166   : > { %1209 = vmatmul.mubr.msk.bf16.vlgmr.msra.gmra.mrb[0].mxu1 %vm397_vm2, %v1423_v10 }
 0x167   : > { %1219 = vmatpush3.bf16.xpose.msra.mxu1 %v517_v15  ;;  %1220 = vmatprep.mubr.msk.bf16.mxu1 %vm1328_vm0, %v1327_v1 }
 0x168   : > { %1230 = vmatprep.subr.bf16.mxu1 %v1327_v1 }
 0x16e   : > { %1221 = vmatmul.mubr.msk.bf16.vlgmr.msra.gmra.mrb[4].mxu1 %vm397_vm2, %v510_v16 }
 0x16f   : > { %1232 = vmatprep.mubr.msk.bf16.mxu1 %vm1328_vm0, %v1327_v1  ;;  %1231 = vmatpush3.bf16.msra.mxu1 %v627_v59 }
 0x170   : > { %1242 = vmatprep.subr.bf16.mxu1 %v1327_v1 }
 0x239   : > { %v438_v17 = vpop.f32.mrb[0].mxu1 }
 0x23a   : > { %v444_v19 = vmul.f32 0.35355338, %v438_v17  ;;  %v1210_v20 = vpop.f32.mrb[1].mxu1 }
 0x23b   : > { %v441_v21 = vpop.f32.mrb[2].mxu1 }
 0x23c   : > { %v1211_v22 = vpop.f32.mrb[3].mxu1  ;;  %v445_v23 = vadd.f32 %v444_v19, %v1443_v18 }
 0x23e   : > { %v446_v24 = vsel %vm397_vm2, %v445_v23, -inf }
 0x23f   : > { %447 = vmax.xlane.f32.xlu1 %v446_v24 }
 0x241   : > { %v553_v25 = vpop.f32.mrb[4].mxu1 }
 0x242   : > { %v559_v26 = vmul.f32 0.35355338, %v553_v25  ;;  %v1222_v27 = vpop.f32.mrb[5].mxu1 }
 0x243   : > { %v556_v28 = vpop.f32.mrb[6].mxu1 }
 0x244   : > { %v1223_v29 = vpop.f32.mrb[7].mxu1  ;;  %v560_v30 = vadd.f32 %v559_v26, %v1443_v18 }
 0x246   : > { %v561_v31 = vsel %vm397_vm2, %v560_v30, -inf }
 0x247   : > { %562 = vmax.xlane.f32.xlu0 %v561_v31 }
 0x2cc   : > { %v448_v32 = vpop.xlane.xlu1 %447 }
 0x2cd   : > { %v449_v33 = vsub.f32 %v445_v23, %v448_v32 }
 0x2cf   : > { %v450_v34 = vmul.f32 1.442695, %v449_v33 }
 0x2d1   : > { %1301 = vpow2.f32 %v450_v34 }
 0x2d4   : > { %v563_v35 = vpop.xlane.xlu0 %562 }
 0x2d5   : > { %v564_v36 = vsub.f32 %v560_v30, %v563_v35 }
 0x2d7   : > { %v565_v37 = vmul.f32 1.442695, %v564_v36 }
 0x2d9   : > { %1303 = vpow2.f32 %v565_v37 }
 0x2db   : > { %v1302_v38 = vpop.eup %1301 }
 0x2dc   : > { %v452_v39 = vsel %vm397_vm2, %v1302_v38, 0.0 }
 0x2dd   : > { %453 = vadd.xlane.f32.xlu0 %v452_v39 }
 0x2e3   : > { %v1304_v40 = vpop.eup %1303 }
 0x2e4   : > { %v567_v41 = vsel %vm397_vm2, %v1304_v40, 0.0 }
 0x2e5   : > { %568 = vadd.xlane.f32.xlu1 %v567_v41 }
 0x2f3   : > { %458 = vrot.lane.b32.xlu0 %v1423_v10, %s1332_s23 }
 0x2f6   : > { %573 = vrot.lane.b32.xlu1 %v1423_v10, %s1333_s24 }
 0x2f7   : > { %715 = vrot.lane.b32.xlu0 %v1423_v10, %s1334_s25 }
 0x2fa   : > { %717 = vrot.lane.b32.xlu1 %v1423_v10, %s1335_s26 }
 0x36a   : > { %v454_v42 = vpop.xlane.xlu0 %453 }
 0x36b   : > { %1305 = vrcp.f32 %v454_v42 }
 0x36e   : > { %v459_v43 = vpop.permute.xlu0 %458 }
 0x36f   : > { %v465_v44 = vsel %vm463_vm3, %v459_v43, 0  ;;  %v391_v43 = vld [vmem:[%s1548_s4 + $0x10] sm:$0xff] }
 0x370   : > { %1213 = vmatpush3.bf16.msra.mxu0 %v465_v44  ;;  %v828_v44 = vpack.c.bf16 %v391_v43, %v391_v43 }
 0x371   : > { %1224 = vmatprep.subr.bf16.mxu0 %v1327_v1 }
 0x372   : > { %v569_v45 = vpop.xlane.xlu1 %568  ;;  %v716_v11 = vpop.permute.xlu0 %715 }
 0x373   : > { %1307 = vrcp.f32 %v569_v45  ;;  %v833_v45 = vsel %vm463_vm3, %v828_v44, 0 }
 0x375   : > { %v1306_v46 = vpop.eup %1305 }
 0x376   : > { %v456_v47 = vmul.f32 %v1306_v46, %v1302_v38  ;;  %v574_v48 = vpop.permute.xlu1 %573 }
 0x377   : > { %v579_v50 = vsel %vm463_vm3, %v574_v48, 0 }
 0x378   : > { %v457_v49 = vpack.c.bf16 %v456_v47, %v456_v47 }
 0x37a   : > { %1215 = vmatmul.mubr.msk.bf16.vlgmr.msra.gmra.mrb[4].mxu0 %vm397_vm2, %v457_v49  ;;  %v718_v2 = vpop.permute.xlu1 %717 }
 0x37b   : > { %1225 = vmatpush3.bf16.msra.mxu0 %v579_v50  ;;  %1226 = vmatprep.mubr.msk.bf16.mxu0 %vm1328_vm0, %v1327_v1  ;;  %v723_v8 = vsel %vm397_vm2, %v718_v2, 0 }
 0x37c   : > { %1236 = vmatprep.subr.bf16.mxu0 %v1327_v1 }
 0x37d   : > { %v1308_v51 = vpop.eup %1307 }
 0x37e   : > { %v571_v52 = vmul.f32 %v1308_v51, %v1304_v40 }
 0x380   : > { %v572_v53 = vpack.c.bf16 %v571_v52, %v571_v52 }
 0x382   : > { %1227 = vmatmul.mubr.msk.bf16.vlgmr.msra.gmra.mrb[8].mxu0 %vm397_vm2, %v572_v53 }
 0x383   : > { %1238 = vmatprep.mubr.msk.bf16.mxu0 %vm1328_vm0, %v1327_v1  ;;  %1237 = vmatpush3.bf16.msra.mxu0 %v673_v57 }
 0x384   : > { %1248 = vmatprep.subr.bf16.mxu0 %v1327_v1 }
 0x44d   : > { %v501_v60 = vpop.f32.mrb[4].mxu0 }
 0x44e   : > { %v507_v61 = vpack.c.bf16 %v501_v60, %v501_v60  ;;  %v1216_v62 = vpop.f32.mrb[5].mxu0 }
 0x44f   : > { %v504_v63 = vpop.f32.mrb[6].mxu0 }
 0x450   : > { %v1217_v0 = vpop.f32.mrb[7].mxu0  ;;  %1239 = vmatmul.mubr.msk.bf16.vlgmr.msra.gmra.mrb[12].mxu0 %vm397_vm2, %v507_v61 }
 0x451   : > { %1250 = vmatprep.mubr.msk.bf16.mxu0 %vm1328_vm0, %v1327_v1 }
 0x455   : > { %v615_v4 = vpop.f32.mrb[8].mxu0 }
 0x456   : > { %v621_v5 = vpack.c.bf16 %v615_v4, %v615_v4  ;;  %v1228_v6 = vpop.f32.mrb[9].mxu0 }
 0x457   : > { %v618_v7 = vpop.f32.mrb[10].mxu0 }
 0x458   : > { %v1229_v9 = vpop.f32.mrb[11].mxu0  ;;  %1233 = vmatmul.mubr.msk.bf16.vlgmr.msra.gmra.mrb[8].mxu1 %vm397_vm2, %v621_v5 }
 0x459   : > { %1243 = vmatpush3.bf16.xpose.msra.mxu1 %v723_v8  ;;  %1244 = vmatprep.mubr.msk.bf16.mxu1 %vm1328_vm0, %v1327_v1 }
 0x45a   : > { %1254 = vmatprep.subr.bf16.mxu1 %v1327_v1 }
 0x460   : > { %1245 = vmatmul.mubr.msk.bf16.vlgmr.msra.gmra.mrb[12].mxu1 %vm397_vm2, %v716_v11 }
 0x461   : > { %1256 = vmatprep.mubr.msk.bf16.mxu1 %vm1328_vm0, %v1327_v1  ;;  %1255 = vmatpush3.bf16.msra.mxu1 %v833_v45 }
 0x462   : > { %1266 = vmatprep.subr.bf16.mxu1 %v1327_v1 }
 0x523   : > { %v709_v12 = vpop.f32.mrb[12].mxu0 }
 0x524   : > { %v1240_v13 = vpop.f32.mrb[13].mxu0 }
 0x525   : > { %v712_v14 = vpop.f32.mrb[14].mxu0 }
 0x526   : > { %v1241_v15 = vpop.f32.mrb[15].mxu0 }
 0x52b   : > { %v663_v16 = vpop.f32.mrb[8].mxu1 }
 0x52c   : > { %v1486_v17 = vadd.f32 %v709_v12, %v663_v16  ;;  %v1234_v19 = vpop.f32.mrb[9].mxu1 }
 0x52d   : > { %v666_v20 = vpop.f32.mrb[10].mxu1 }
 0x52e   : > { %v1235_v21 = vpop.f32.mrb[11].mxu1 }
 0x533   : > { %v759_v22 = vpop.f32.mrb[12].mxu1 }
 0x534   : > { %v765_v23 = vmul.f32 0.35355338, %v759_v22  ;;  %v1246_v24 = vpop.f32.mrb[13].mxu1 }
 0x535   : > { %v762_v25 = vpop.f32.mrb[14].mxu1 }
 0x536   : > { %v1247_v26 = vpop.f32.mrb[15].mxu1  ;;  %v766_v27 = vadd.f32 %v765_v23, %v1443_v18 }
 0x538   : > { %v767_v28 = vsel %vm397_vm2, %v766_v27, -inf }
 0x539   : > { %768 = vmax.xlane.f32.xlu1 %v767_v28 }
 0x54a   : > { %878 = vrot.lane.b32.xlu1 %v1423_v10, %s1336_s10 }
 0x54e   : > { %876 = vrot.lane.b32.xlu1 %v1423_v10, %s1337_s12 }
 0x5c6   : > { %v769_v29 = vpop.xlane.xlu1 %768 }
 0x5c7   : > { %v770_v30 = vsub.f32 %v766_v27, %v769_v29 }
 0x5c9   : > { %v771_v31 = vmul.f32 1.442695, %v770_v30 }
 0x5ca   : > { %v879_v39 = vpop.permute.xlu1 %878 }
 0x5cb   : > { %1309 = vpow2.f32 %v771_v31  ;;  %v884_v41 = vsel %vm397_vm2, %v879_v39, 0 }
 0x5ce   : > { %v877_v42 = vpop.permute.xlu1 %876 }
 0x5d5   : > { %v1310_v32 = vpop.eup %1309 }
 0x5d6   : > { %v773_v33 = vsel %vm397_vm2, %v1310_v32, 0.0 }
 0x5d7   : > { %774 = vadd.xlane.f32.xlu0 %v773_v33 }
 0x5ed   : > { %779 = vrot.lane.b32.xlu0 %v1423_v10, %s1338_s13 }
 0x664   : > { %v775_v34 = vpop.xlane.xlu0 %774 }
 0x665   : > { %1311 = vrcp.f32 %v775_v34 }
 0x668   : > { %v780_v35 = vpop.permute.xlu0 %779 }
 0x669   : > { %v785_v36 = vsel %vm463_vm3, %v780_v35, 0 }
 0x66a   : > { %1249 = vmatpush3.bf16.msra.mxu0 %v785_v36 }
 0x66b   : > { %1260 = vmatprep.subr.bf16.mxu0 %v1327_v1 }
 0x66f   : > { %v1312_v37 = vpop.eup %1311 }
 0x670   : > { %v777_v38 = vmul.f32 %v1312_v37, %v1310_v32 }
 0x672   : > { %v778_v40 = vpack.c.bf16 %v777_v38, %v777_v38  ;;  %v1168_v38 = vld [vmem:[%s1551_s7] ss:$0 sm:$0xff] }
 0x674   : > { %1251 = vmatmul.mubr.msk.bf16.vlgmr.msra.gmra.mrb[16].mxu0 %vm397_vm2, %v778_v40 }
 0x675   : > { %1261 = vmatpush3.bf16.xpose.msra.mxu0 %v884_v41  ;;  %1262 = vmatprep.mubr.msk.bf16.mxu0 %vm1328_vm0, %v1327_v1 }
 0x676   : > { %1272 = vmatprep.subr.bf16.mxu0 %v1327_v1 }
 0x67c   : > { %1263 = vmatmul.mubr.msk.bf16.vlgmr.msra.gmra.mrb[20].mxu0 %vm397_vm2, %v877_v42 }
 0x67d   : > { %1274 = vmatprep.mubr.msk.bf16.mxu0 %vm1328_vm0, %v1327_v1 }
 0x747   : > { %v821_v46 = vpop.f32.mrb[16].mxu0 }
 0x748   : > { %v827_v47 = vpack.c.bf16 %v821_v46, %v821_v46  ;;  %v1252_v48 = vpop.f32.mrb[17].mxu0 }
 0x749   : > { %v824_v49 = vpop.f32.mrb[18].mxu0 }
 0x74a   : > { %v1253_v50 = vpop.f32.mrb[19].mxu0  ;;  %1257 = vmatmul.mubr.msk.bf16.vlgmr.msra.gmra.mrb[16].mxu1 %vm397_vm2, %v827_v47 }
 0x74b   : > { %1268 = vmatprep.mubr.msk.bf16.mxu1 %vm1328_vm0, %v1327_v1 }
 0x74f   : > { %v920_v51 = vpop.f32.mrb[20].mxu0 }
 0x750   : > { %v926_v52 = vmul.f32 0.35355338, %v920_v51  ;;  %v1264_v53 = vpop.f32.mrb[21].mxu0 }
 0x751   : > { %v923_v54 = vpop.f32.mrb[22].mxu0 }
 0x752   : > { %v1265_v55 = vpop.f32.mrb[23].mxu0  ;;  %v927_v56 = vadd.f32 %v926_v52, %v1443_v18  ;;  %v392_v18 = vld [vmem:[%s1548_s4 + $0x18] sm:$0xff] }
 0x753   : > { %v989_v0 = vpack.c.bf16 %v392_v18, %v392_v18 }
 0x754   : > { %v928_v57 = vsel %vm397_vm2, %v927_v56, -inf }
 0x755   : > { %929 = vmax.xlane.f32.xlu0 %v928_v57  ;;  %v994_v2 = vsel %vm463_vm3, %v989_v0, 0 }
 0x756   : > { %1273 = vmatpush3.bf16.msra.mxu0 %v994_v2 }
 0x76b   : > { %940 = vrot.lane.b32.xlu0 %v1423_v10, %s1339_s16 }
 0x7e2   : > { %v930_v58 = vpop.xlane.xlu0 %929 }
 0x7e3   : > { %v931_v59 = vsub.f32 %v927_v56, %v930_v58 }
 0x7e5   : > { %v932_v60 = vmul.f32 1.442695, %v931_v59 }
 0x7e6   : > { %v941_v61 = vpop.permute.xlu0 %940 }
 0x7e7   : > { %1313 = vpow2.f32 %v932_v60  ;;  %v946_v1 = vsel %vm463_vm3, %v941_v61, 0 }
 0x7e8   : > { %1267 = vmatpush3.bf16.msra.mxu1 %v946_v1 }
 0x7f1   : > { %v1314_v62 = vpop.eup %1313 }
 0x7f2   : > { %v934_v63 = vsel %vm397_vm2, %v1314_v62, 0.0 }
 0x7f3   : > { %935 = vadd.xlane.f32.xlu1 %v934_v63 }
 0x81d   : > { %v869_v10 = vpop.f32.mrb[16].mxu1 }
 0x81e   : > { %v875_v4 = vadd.f32 %v869_v10, %v1486_v17  ;;  %v1258_v5 = vpop.f32.mrb[17].mxu1  ;;  %v1166_v17 = vld [vmem:[%s1549_s5] ss:$0 sm:$0xff] }
 0x81f   : > { %v872_v6 = vpop.f32.mrb[18].mxu1 }
 0x820   : > { %v1259_v7 = vpop.f32.mrb[19].mxu1 }
 0x880   : > { %v936_v8 = vpop.xlane.xlu1 %935 }
 0x881   : > { %1315 = vrcp.f32 %v936_v8 }
 0x88b   : > { %v1316_v9 = vpop.eup %1315 }
 0x88c   : > { %v938_v11 = vmul.f32 %v1316_v9, %v1314_v62 }
 0x88e   : > { %v939_v12 = vpack.c.bf16 %v938_v11, %v938_v11 }
 0x890   : > { %1269 = vmatmul.mubr.msk.bf16.vlgmr.msra.gmra.mrb[20].mxu1 %vm397_vm2, %v939_v12 }
 0x963   : > { %v982_v13 = vpop.f32.mrb[20].mxu1 }
 0x964   : > { %v988_v14 = vpack.c.bf16 %v982_v13, %v982_v13  ;;  %v1270_v15 = vpop.f32.mrb[21].mxu1 }
 0x965   : > { %v985_v16 = vpop.f32.mrb[22].mxu1 }
 0x966   : > { %v1271_v19 = vpop.f32.mrb[23].mxu1  ;;  %1275 = vmatmul.mubr.msk.bf16.vlgmr.msra.gmra.mrb[24].mxu0 %vm397_vm2, %v988_v14 }
 0xa39   : > { %v1030_v20 = vpop.f32.mrb[24].mxu0 }
 0xa3a   : > { %v1036_v21 = vadd.f32 %v1030_v20, %v875_v4  ;;  %v1276_v22 = vpop.f32.mrb[25].mxu0 }
 0xa3b   : > { %v1033_v23 = vpop.f32.mrb[26].mxu0 }
 0xa3c   : > { %v1044_v24 = vadd.f32 %v1166_v17, %v1036_v21  ;;  %v1277_v25 = vpop.f32.mrb[27].mxu0 }
 0xa3e   : > { %v1045_v26 = vadd.f32 %v1044_v24, %v1413_v3  ;;  %v1167_v3 = vld [vmem:[%s1550_s6] ss:$0 sm:$0xff] }
 0xa40   : > { %v1046_v27 = vsel %vm344_vm1, %v1045_v26, 0.0 }
 0xa41   : > { %1047 = vadd.xlane.f32.xlu1 %v1046_v27 }
 0xace   : > { %v1048_v28 = vpop.xlane.xlu1 %1047 }
 0xacf   : > { %v1050_v29 = vmul.f32 0.03125, %v1048_v28 }
 0xad1   : > { %v1051_v30 = vsub.f32 %v1045_v26, %v1050_v29 }
 0xad3   : > { %v1052_v31 = vmul.f32 %v1051_v30, %v1051_v30 }
 0xad5   : > { %v1053_v32 = vsel %vm344_vm1, %v1052_v31, 0.0 }
 0xad6   : > { %1054 = vadd.xlane.f32.xlu1 %v1053_v32 }
 0xb63   : > { %v1055_v33 = vpop.xlane.xlu1 %1054 }
 0xb64   : > { %v1056_v34 = vmul.f32 0.03125, %v1055_v33 }
 0xb66   : > { %v1057_v35 = vadd.f32 1e-05, %v1056_v34 }
 0xb68   : > { %1317 = vrsqrt.f32 %v1057_v35 }
 0xb72   : > { %v1318_v36 = vpop.eup %1317 }
 0xb73   : > { %v1059_v37 = vmul.f32 %v1318_v36, %v1051_v30 }
 0xb75   : > { %v1067_v39 = vmul.f32 %v1167_v3, %v1059_v37 }
 0xb77   : > { %v1075_v40 = vadd.f32 %v1168_v38, %v1067_v39 }
 0xb79   : > { %1076 = vst.msk [vmem:[%s317_s28] sm:$0xff] %vm344_vm1, %v1075_v40 }
 0xb7a PF: > { %s18_s27 = sadd.s32 1, %s1325_s27  }
 0xb7b   : > { %p15_p4 = scmp.ge.s32.totalorder %s18_s27, 4  }
 0xb7d   :  { %17 = sbr.rel (!%p15_p4) target bundleno = 1 (0x1), region = 85 }

// kernel: _lambda_.9
= control target key start
LH: loop header
LB: loop body
LE: loop exit
PB: predicated region body
PF: predicated region fallthrough
CT: control target
= control target key end

     0   :  { %s1521_s13 = smov 0   ;;  %s1690_s0 = inlined_call_operand.vmem [shape: f32[2,8,32], index: 0, kind: input, shape index: {}]   ;;  %s1691_s1 = inlined_call_operand.vmem [shape: f32[2,8,32], index: 1, kind: input, shape index: {}]   ;;  %s1692_s2 = inlined_call_operand.vmem [shape: bf16[32,32], index: 2, kind: input, shape index: {}]   ;;  %s1693_s3 = inlined_call_operand.vmem [shape: f32[1,32], index: 3, kind: input, shape index: {}]   ;;  %s1694_s4 = inlined_call_operand.vmem [shape: bf16[32,64], index: 4, kind: input, shape index: {}]   ;;  %s1695_s5 = inlined_call_operand.vmem [shape: f32[1,64], index: 5, kind: input, shape index: {}]   ;;  %s1696_s6 = inlined_call_operand.vmem [shape: f32[32,32], index: 6, kind: input, shape index: {}]   ;;  %s1697_s7 = inlined_call_operand.vmem [shape: f32[1,32], index: 7, kind: input, shape index: {}]   ;;  %s1698_s8 = inlined_call_operand.vmem [shape: f32[1,32], index: 8, kind: input, shape index: {}]   ;;  %s1699_s9 = inlined_call_operand.vmem [shape: f32[1,32], index: 9, kind: input, shape index: {}]   ;;  %s1700_s10 = inlined_call_operand.vmem [shape: f32[2,8,32], index: 10, kind: output, shape index: {}]  }
   0x1 LB: > { %s1259_s14 = sadd.s32 4294967295, %s1455_s13   ;;  %p1263_p0 = scmp.ge.s32.totalorder %s1455_s13, 1  ;;  %s1455_s13 = sphi %s1521_s13, %s20_s13  }
   0x2   : > { %p320_p1 = scmp.lt.s32.totalorder %s1455_s13, 3 }
   0x4   : > { %p321_p2 = pnand %p1263_p0, %p320_p1 }
   0x5   : > { %v1427_v0 = vld [vmem:[%s1694_s4] sm:$0xff] (!%p321_p2)   ;;  %v1457_v1 = vmov (!%p321_p2), 0.0   ;;  %v1428_v2 = vld [vmem:[%s1694_s4 + $0x8] sm:$0xff] (!%p321_p2)   ;;  %vm1458_vm0 = vmmov (!%p321_p2), 0   ;;  %p360_p3 = scmp.lt.s32.totalorder (!%p321_p2), %s1259_s14, 1  ;;  %vm399_vm1 = vcmask (!%p321_p2), 261120  }
   0x6   : > { %324 = sbr.rel (%p321_p2) target bundleno = 2924 (0xb6c), region = 60  ;;  %1330 = vmatprep.subr.bf16.mxu1 (!%p321_p2), %v1457_v1  ;;  %1322 = vmatprep.subr.bf16.mxu0 (!%p321_p2), %v1457_v1  ;;  %v1429_v3 = vld [vmem:[%s1692_s2] sm:$0xff] (!%p321_p2)   ;;  %v1430_v4 = vld [vmem:[%s1692_s2 + $0x8] sm:$0xff] (!%p321_p2)   ;;  %vm516_vm2 = vcmask (!%p321_p2), 64512   ;;  %s1459_s15 = smov (!%p321_p2), 120   ;;  %vm582_vm3 = vcmask (!%p321_p2), 1043456  }
   0x7   : > { %1331 = vmatpush3.bf16.msra.mxu1 (!%p321_p2), %v1427_v0  ;;  %1334 = vmatprep.mubr.msk.bf16.mxu1 (!%p321_p2), %vm1458_vm0, %v1457_v1  ;;  %v1271_v9 = vld [vmem:[%s1695_s5] ss:$0 sm:$0xff] (!%p321_p2)  ;;  %s1460_s16 = smov (!%p321_p2), 96   ;;  %s1461_s17 = smov (!%p321_p2), 88   ;;  %v511_v55 = vld [vmem:[%s1696_s6 + $0x8] sm:$0xff] (!%p321_p2) }
   0x8   : > { %1332 = vmatprep.subr.bf16.mxu1 (!%p321_p2), %v1457_v1  ;;  %1326 = vmatprep.mubr.msk.bf16.mxu0 (!%p321_p2), %vm1458_vm0, %v1457_v1  ;;  %v1267_v10 = vld [vmem:[%s1693_s3] ss:$0 sm:$0xff] (!%p321_p2)  ;;  %s1462_s18 = smov (!%p321_p2), 112   ;;  %v741_v56 = vpack.c.bf16 (!%p321_p2), %v511_v55, %v511_v55  ;;  %s1463_s24 = smov (!%p321_p2), 80  }
   0x9   : > { %1323 = vmatpush3.bf16.msra.mxu0 (!%p321_p2), %v1429_v3  ;;  %v510_v61 = vld [vmem:[%s1696_s6] sm:$0xff] (!%p321_p2)  ;;  %s1464_s25 = smov (!%p321_p2), 104   ;;  %s1465_s28 = smov (!%p321_p2), 72  }
   0xa   : > { %1324 = vmatprep.subr.bf16.mxu0 (!%p321_p2), %v1457_v1  ;;  %v746_v57 = vsel (!%p321_p2), %vm582_vm3, %v741_v56, 0  ;;  %v627_v62 = vpack.c.bf16 (!%p321_p2), %v510_v61, %v510_v61 }
   0xb   : > { %1333 = vmatpush3.bf16.msra.mxu1 (!%p321_p2), %v1428_v2 }
   0xc   : > { %1344 = vmatprep.subr.bf16.mxu1 (!%p321_p2), %v1457_v1  ;;  %v792_v3 = vsel (!%p321_p2), %vm582_vm3, %v627_v62, 0 }
   0xd   : > { %s1702_s14 = smov (!%p360_p3, %s1259_s14), 1  ;;  %1325 = vmatpush3.bf16.msra.mxu0 %v1430_v4 }
   0xe   : > { %s1549_s23 = sshll.u32 %s1702_s14, 3  ;;  %1338 = vmatprep.subr.bf16.mxu0 %v1457_v1 }
   0xf   : > { %s367_s26 = scalar_lea.vmem %s1691_s1, %s1549_s23  ;;  %s363_s29 = scalar_lea.vmem %s1690_s0, %s1549_s23 }
  0x10   : > { %v374_v5 = vld [vmem:[%s367_s26] sm:$0xff]  ;;  %s371_s20 = scalar_lea.vmem %s1700_s10, %s1549_s23 }
  0x11   : > { %v443_v6 = vpack.c.bf16 %v374_v5, %v374_v5  ;;  %v1560_v7 = vld [vmem:[%s363_s29] sm:$0xff] }
  0x12   : > { %v375_v8 = vpack.c.bf16 %v1560_v7, %v1560_v7 }
  0x13   : > { %1335 = vmatmul.mubr.msk.bf16.vlgmr.msra.gmra.mrb[0].mxu1 %vm399_vm1, %v443_v6 }
  0x14   : > { %1327 = vmatmul.mubr.msk.bf16.vlgmr.msra.gmra.mrb[0].mxu0 %vm399_vm1, %v375_v8  ;;  %1346 = vmatprep.mubr.msk.bf16.mxu1 %vm1458_vm0, %v1457_v1 }
  0x15   : > { %1340 = vmatprep.mubr.msk.bf16.mxu0 %vm1458_vm0, %v1457_v1 }
  0xe6   : > { %v504_v11 = vpop.f32.mrb[0].mxu1 }
  0xe7   : > { %v505_v12 = vadd.f32 %v1271_v9, %v504_v11  ;;  %v1336_v13 = vpop.f32.mrb[1].mxu1  ;;  %v437_v14 = vpop.f32.mrb[0].mxu0 }
  0xe8   : > { %v507_v15 = vpop.f32.mrb[2].mxu1  ;;  %v438_v16 = vadd.f32 %v1267_v10, %v437_v14  ;;  %v1328_v17 = vpop.f32.mrb[1].mxu0 }
  0xe9   : > { %v1577_v18 = vpack.c.bf16 %v505_v12, %v505_v12  ;;  %v1337_v19 = vpop.f32.mrb[3].mxu1  ;;  %v440_v20 = vpop.f32.mrb[2].mxu0 }
  0xea   : > { %v1329_v21 = vpop.f32.mrb[3].mxu0  ;;  %v1580_v22 = vpack.c.bf16 %v438_v16, %v438_v16 }
  0xeb   : > { %631 = vrot.lane.b32.xlu0 %v1577_v18, %s1459_s15  ;;  %v521_v23 = vsel %vm516_vm2, %v1577_v18, 0 }
  0xec   : > { %1339 = vmatpush3.bf16.xpose.msra.mxu0 %v521_v23 }
  0xed   : > { %1350 = vmatprep.subr.bf16.mxu0 %v1457_v1 }
  0xef   : > { %629 = vrot.lane.b32.xlu0 %v1580_v22, %s1459_s15 }
  0xf3   : > { %1341 = vmatmul.mubr.msk.bf16.vlgmr.msra.gmra.mrb[4].mxu0 %vm516_vm2, %v1580_v22 }
  0xf4   : > { %1352 = vmatprep.mubr.msk.bf16.mxu0 %vm1458_vm0, %v1457_v1 }
 0x15d   : > { %v632_v24 = vpop.permute.xlu0 %631 }
 0x15e   : > { %v637_v25 = vsel %vm516_vm2, %v632_v24, 0 }
 0x15f   : > { %1351 = vmatpush3.bf16.xpose.msra.mxu0 %v637_v25 }
 0x160   : > { %1362 = vmatprep.subr.bf16.mxu0 %v1457_v1 }
 0x161   : > { %v630_v26 = vpop.permute.xlu0 %629 }
 0x166   : > { %1353 = vmatmul.mubr.msk.bf16.vlgmr.msra.gmra.mrb[8].mxu0 %vm516_vm2, %v630_v26 }
 0x167   : > { %1364 = vmatprep.mubr.msk.bf16.mxu0 %vm1458_vm0, %v1457_v1  ;;  %1363 = vmatpush3.bf16.msra.mxu0 %v746_v57 }
 0x168   : > { %1374 = vmatprep.subr.bf16.mxu0 %v1457_v1 }
 0x1c6   : > { %v557_v27 = vpop.f32.mrb[4].mxu0 }
 0x1c7   : > { %v563_v28 = vmul.f32 0.35355338, %v557_v27  ;;  %v1342_v29 = vpop.f32.mrb[5].mxu0 }
 0x1c8   : > { %v560_v30 = vpop.f32.mrb[6].mxu0 }
 0x1c9   : > { %v1343_v31 = vpop.f32.mrb[7].mxu0  ;;  %v564_v32 = vsel %vm516_vm2, %v563_v28, -inf }
 0x1ca   : > { %565 = vmax.xlane.f32.xlu1 %v564_v32 }
 0x239   : > { %v673_v33 = vpop.f32.mrb[8].mxu0 }
 0x23a   : > { %v679_v34 = vmul.f32 0.35355338, %v673_v33  ;;  %v1354_v35 = vpop.f32.mrb[9].mxu0 }
 0x23b   : > { %v676_v36 = vpop.f32.mrb[10].mxu0 }
 0x23c   : > { %v1355_v37 = vpop.f32.mrb[11].mxu0  ;;  %v680_v38 = vsel %vm516_vm2, %v679_v34, -inf }
 0x23d   : > { %681 = vmax.xlane.f32.xlu1 %v680_v38 }
 0x24e   : > { %577 = vrot.lane.b32.xlu1 %v1577_v18, %s1460_s16 }
 0x257   : > { %v566_v39 = vpop.xlane.xlu1 %565 }
 0x258   : > { %v567_v40 = vsub.f32 %v563_v28, %v566_v39 }
 0x25a   : > { %v568_v41 = vmul.f32 1.442695, %v567_v40 }
 0x25c   : > { %1431 = vpow2.f32 %v568_v41 }
 0x266   : > { %v1432_v42 = vpop.eup %1431 }
 0x267   : > { %v570_v43 = vsel %vm516_vm2, %v1432_v42, 0.0 }
 0x268   : > { %571 = vadd.xlane.f32.xlu0 %v570_v43 }
 0x2ca   : > { %v682_v44 = vpop.xlane.xlu1 %681 }
 0x2cb   : > { %v683_v45 = vsub.f32 %v679_v34, %v682_v44 }
 0x2cd   : > { %v684_v46 = vmul.f32 1.442695, %v683_v45 }
 0x2ce   : > { %v578_v47 = vpop.permute.xlu1 %577 }
 0x2cf   : > { %1433 = vpow2.f32 %v684_v46  ;;  %v584_v48 = vsel %vm582_vm3, %v578_v47, 0 }
 0x2d0   : > { %1345 = vmatpush3.bf16.msra.mxu1 %v584_v48  ;;  %v512_v48 = vld [vmem:[%s1696_s6 + $0x10] sm:$0xff] }
 0x2d1   : > { %1356 = vmatprep.subr.bf16.mxu1 %v1457_v1 }
 0x2d9   : > { %v1434_v49 = vpop.eup %1433 }
 0x2da   : > { %v686_v50 = vsel %vm516_vm2, %v1434_v49, 0.0 }
 0x2db   : > { %687 = vadd.xlane.f32.xlu1 %v686_v50 }
 0x2ec   : > { %692 = vrot.lane.b32.xlu1 %v1577_v18, %s1461_s17 }
 0x2f0   : > { %836 = vrot.lane.b32.xlu1 %v1577_v18, %s1462_s18 }
 0x2f4   : > { %834 = vrot.lane.b32.xlu1 %v1580_v22, %s1462_s18 }
 0x2f5   : > { %v572_v51 = vpop.xlane.xlu0 %571 }
 0x2f6   : > { %1435 = vrcp.f32 %v572_v51 }
 0x300   : > { %v1436_v52 = vpop.eup %1435 }
 0x301   : > { %v574_v53 = vmul.f32 %v1436_v52, %v1432_v42 }
 0x303   : > { %v575_v54 = vpack.c.bf16 %v574_v53, %v574_v53 }
 0x305   : > { %1347 = vmatmul.mubr.msk.bf16.vlgmr.msra.gmra.mrb[4].mxu1 %vm516_vm2, %v575_v54 }
 0x306   : > { %1358 = vmatprep.mubr.msk.bf16.mxu1 %vm1458_vm0, %v1457_v1 }
 0x368   : > { %v688_v58 = vpop.xlane.xlu1 %687 }
 0x369   : > { %1437 = vrcp.f32 %v688_v58 }
 0x36c   : > { %v693_v59 = vpop.permute.xlu1 %692 }
 0x36d   : > { %v698_v60 = vsel %vm582_vm3, %v693_v59, 0 }
 0x36e   : > { %1357 = vmatpush3.bf16.msra.mxu1 %v698_v60 }
 0x36f   : > { %1368 = vmatprep.subr.bf16.mxu1 %v1457_v1 }
 0x370   : > { %v837_v10 = vpop.permute.xlu1 %836 }
 0x371   : > { %v842_v15 = vsel %vm516_vm2, %v837_v10, 0 }
 0x373   : > { %v1438_v63 = vpop.eup %1437 }
 0x374   : > { %v690_v0 = vmul.f32 %v1438_v63, %v1434_v49  ;;  %v835_v17 = vpop.permute.xlu1 %834  ;;  %v946_v49 = vpack.c.bf16 %v512_v48, %v512_v48 }
 0x376   : > { %v691_v2 = vpack.c.bf16 %v690_v0, %v690_v0  ;;  %v951_v50 = vsel %vm582_vm3, %v946_v49, 0 }
 0x378   : > { %1359 = vmatmul.mubr.msk.bf16.vlgmr.msra.gmra.mrb[8].mxu1 %vm516_vm2, %v691_v2 }
 0x379   : > { %1369 = vmatpush3.bf16.msra.mxu1 %v792_v3  ;;  %1370 = vmatprep.mubr.msk.bf16.mxu1 %vm1458_vm0, %v1457_v1 }
 0x37a   : > { %1380 = vmatprep.subr.bf16.mxu1 %v1457_v1 }
 0x3d8   : > { %v620_v4 = vpop.f32.mrb[4].mxu1 }
 0x3d9   : > { %v626_v5 = vpack.c.bf16 %v620_v4, %v620_v4  ;;  %v1348_v6 = vpop.f32.mrb[5].mxu1 }
 0x3da   : > { %v623_v8 = vpop.f32.mrb[6].mxu1 }
 0x3db   : > { %v1349_v9 = vpop.f32.mrb[7].mxu1  ;;  %1371 = vmatmul.mubr.msk.bf16.vlgmr.msra.gmra.mrb[12].mxu1 %vm516_vm2, %v626_v5 }
 0x3dc   : > { %1382 = vmatprep.mubr.msk.bf16.mxu1 %vm1458_vm0, %v1457_v1 }
 0x44b   : > { %v734_v11 = vpop.f32.mrb[8].mxu1 }
 0x44c   : > { %v740_v12 = vpack.c.bf16 %v734_v11, %v734_v11  ;;  %v1360_v13 = vpop.f32.mrb[9].mxu1 }
 0x44d   : > { %v737_v14 = vpop.f32.mrb[10].mxu1 }
 0x44e   : > { %v1361_v16 = vpop.f32.mrb[11].mxu1  ;;  %1365 = vmatmul.mubr.msk.bf16.vlgmr.msra.gmra.mrb[12].mxu0 %vm516_vm2, %v740_v12 }
 0x44f   : > { %1375 = vmatpush3.bf16.xpose.msra.mxu0 %v842_v15  ;;  %1376 = vmatprep.mubr.msk.bf16.mxu0 %vm1458_vm0, %v1457_v1 }
 0x450   : > { %1386 = vmatprep.subr.bf16.mxu0 %v1457_v1 }
 0x456   : > { %1377 = vmatmul.mubr.msk.bf16.vlgmr.msra.gmra.mrb[16].mxu0 %vm516_vm2, %v835_v17 }
 0x457   : > { %1388 = vmatprep.mubr.msk.bf16.mxu0 %vm1458_vm0, %v1457_v1  ;;  %1387 = vmatpush3.bf16.msra.mxu0 %v951_v50 }
 0x458   : > { %1398 = vmatprep.subr.bf16.mxu0 %v1457_v1 }
 0x4ae   : > { %v828_v19 = vpop.f32.mrb[12].mxu1 }
 0x4af   : > { %v1372_v20 = vpop.f32.mrb[13].mxu1 }
 0x4b0   : > { %v831_v21 = vpop.f32.mrb[14].mxu1 }
 0x4b1   : > { %v1373_v23 = vpop.f32.mrb[15].mxu1 }
 0x521   : > { %v782_v24 = vpop.f32.mrb[12].mxu0 }
 0x522   : > { %v1634_v25 = vadd.f32 %v828_v19, %v782_v24  ;;  %v1366_v26 = vpop.f32.mrb[13].mxu0 }
 0x523   : > { %v785_v27 = vpop.f32.mrb[14].mxu0 }
 0x524   : > { %v1367_v28 = vpop.f32.mrb[15].mxu0 }
 0x529   : > { %v878_v29 = vpop.f32.mrb[16].mxu0 }
 0x52a   : > { %v884_v30 = vmul.f32 0.35355338, %v878_v29  ;;  %v1378_v31 = vpop.f32.mrb[17].mxu0 }
 0x52b   : > { %v881_v32 = vpop.f32.mrb[18].mxu0 }
 0x52c   : > { %v1379_v33 = vpop.f32.mrb[19].mxu0  ;;  %v885_v34 = vsel %vm516_vm2, %v884_v30, -inf }
 0x52d   : > { %886 = vmax.xlane.f32.xlu0 %v885_v34 }
 0x543   : > { %897 = vrot.lane.b32.xlu0 %v1577_v18, %s1463_s24 }
 0x547   : > { %996 = vrot.lane.b32.xlu0 %v1577_v18, %s1464_s25 }
 0x54b   : > { %994 = vrot.lane.b32.xlu0 %v1580_v22, %s1464_s25 }
 0x5ba   : > { %v887_v35 = vpop.xlane.xlu0 %886 }
 0x5bb   : > { %v888_v36 = vsub.f32 %v884_v30, %v887_v35 }
 0x5bd   : > { %v889_v37 = vmul.f32 1.442695, %v888_v36 }
 0x5be   : > { %v898_v38 = vpop.permute.xlu0 %897 }
 0x5bf   : > { %1439 = vpow2.f32 %v889_v37  ;;  %v903_v39 = vsel %vm582_vm3, %v898_v38, 0 }
 0x5c0   : > { %1381 = vmatpush3.bf16.msra.mxu1 %v903_v39 }
 0x5c1   : > { %1392 = vmatprep.subr.bf16.mxu1 %v1457_v1 }
 0x5c2   : > { %v997_v45 = vpop.permute.xlu0 %996 }
 0x5c3   : > { %v1002_v46 = vsel %vm516_vm2, %v997_v45, 0 }
 0x5c6   : > { %v995_v47 = vpop.permute.xlu0 %994 }
 0x5c9   : > { %v1440_v40 = vpop.eup %1439 }
 0x5ca   : > { %v891_v41 = vsel %vm516_vm2, %v1440_v40, 0.0 }
 0x5cb   : > { %892 = vadd.xlane.f32.xlu1 %v891_v41 }
 0x658   : > { %v893_v42 = vpop.xlane.xlu1 %892 }
 0x659   : > { %1441 = vrcp.f32 %v893_v42 }
 0x663   : > { %v1442_v43 = vpop.eup %1441 }
 0x664   : > { %v895_v44 = vmul.f32 %v1442_v43, %v1440_v40  ;;  %v1289_v43 = vld [vmem:[%s1699_s9] ss:$0 sm:$0xff] }
 0x666   : > { %v896_v22 = vpack.c.bf16 %v895_v44, %v895_v44 }
 0x668   : > { %1383 = vmatmul.mubr.msk.bf16.vlgmr.msra.gmra.mrb[16].mxu1 %vm516_vm2, %v896_v22 }
 0x669   : > { %1393 = vmatpush3.bf16.xpose.msra.mxu1 %v1002_v46  ;;  %1394 = vmatprep.mubr.msk.bf16.mxu1 %vm1458_vm0, %v1457_v1 }
 0x66a   : > { %1404 = vmatprep.subr.bf16.mxu1 %v1457_v1 }
 0x670   : > { %1395 = vmatmul.mubr.msk.bf16.vlgmr.msra.gmra.mrb[20].mxu1 %vm516_vm2, %v995_v47 }
 0x671   : > { %1406 = vmatprep.mubr.msk.bf16.mxu1 %vm1458_vm0, %v1457_v1 }
 0x73b   : > { %v939_v51 = vpop.f32.mrb[16].mxu1 }
 0x73c   : > { %v945_v52 = vpack.c.bf16 %v939_v51, %v939_v51  ;;  %v1384_v53 = vpop.f32.mrb[17].mxu1 }
 0x73d   : > { %v942_v54 = vpop.f32.mrb[18].mxu1 }
 0x73e   : > { %v1385_v55 = vpop.f32.mrb[19].mxu1  ;;  %1389 = vmatmul.mubr.msk.bf16.vlgmr.msra.gmra.mrb[20].mxu0 %vm516_vm2, %v945_v52 }
 0x73f   : > { %1400 = vmatprep.mubr.msk.bf16.mxu0 %vm1458_vm0, %v1457_v1  ;;  %v513_v1 = vld [vmem:[%s1696_s6 + $0x18] sm:$0xff] }
 0x740   : > { %v1106_v4 = vpack.c.bf16 %v513_v1, %v513_v1 }
 0x742   : > { %v1111_v5 = vsel %vm582_vm3, %v1106_v4, 0 }
 0x743   : > { %v1038_v56 = vpop.f32.mrb[20].mxu1  ;;  %1405 = vmatpush3.bf16.msra.mxu1 %v1111_v5 }
 0x744   : > { %v1044_v57 = vmul.f32 0.35355338, %v1038_v56  ;;  %v1396_v58 = vpop.f32.mrb[21].mxu1 }
 0x745   : > { %v1041_v59 = vpop.f32.mrb[22].mxu1 }
 0x746   : > { %v1397_v60 = vpop.f32.mrb[23].mxu1  ;;  %v1045_v61 = vsel %vm516_vm2, %v1044_v57, -inf }
 0x747   : > { %1046 = vmax.xlane.f32.xlu0 %v1045_v61 }
 0x7d4   : > { %v1047_v62 = vpop.xlane.xlu0 %1046 }
 0x7d5   : > { %v1048_v63 = vsub.f32 %v1044_v57, %v1047_v62 }
 0x7d7   : > { %v1049_v0 = vmul.f32 1.442695, %v1048_v63 }
 0x7d9   : > { %1443 = vpow2.f32 %v1049_v0 }
 0x7e3   : > { %v1444_v2 = vpop.eup %1443 }
 0x7e4   : > { %v1051_v3 = vsel %vm516_vm2, %v1444_v2, 0.0 }
 0x7e5   : > { %1052 = vadd.xlane.f32.xlu1 %v1051_v3 }
 0x7f6   : > { %1057 = vrot.lane.b32.xlu1 %v1577_v18, %s1465_s28 }
 0x811   : > { %v987_v6 = vpop.f32.mrb[20].mxu0 }
 0x812   : > { %v993_v8 = vadd.f32 %v987_v6, %v1634_v25  ;;  %v1390_v9 = vpop.f32.mrb[21].mxu0  ;;  %v1287_v25 = vld [vmem:[%s1697_s7] ss:$0 sm:$0xff] }
 0x813   : > { %v990_v10 = vpop.f32.mrb[22].mxu0 }
 0x814   : > { %v1391_v11 = vpop.f32.mrb[23].mxu0 }
 0x872   : > { %v1053_v12 = vpop.xlane.xlu1 %1052 }
 0x873   : > { %1445 = vrcp.f32 %v1053_v12 }
 0x876   : > { %v1058_v13 = vpop.permute.xlu1 %1057 }
 0x877   : > { %v1063_v14 = vsel %vm582_vm3, %v1058_v13, 0 }
 0x878   : > { %1399 = vmatpush3.bf16.msra.mxu0 %v1063_v14 }
 0x87d   : > { %v1446_v18 = vpop.eup %1445 }
 0x87e   : > { %v1055_v15 = vmul.f32 %v1446_v18, %v1444_v2 }
 0x880   : > { %v1056_v16 = vpack.c.bf16 %v1055_v15, %v1055_v15 }
 0x882   : > { %1401 = vmatmul.mubr.msk.bf16.vlgmr.msra.gmra.mrb[24].mxu0 %vm516_vm2, %v1056_v16 }
 0x955   : > { %v1099_v17 = vpop.f32.mrb[24].mxu0 }
 0x956   : > { %v1105_v19 = vpack.c.bf16 %v1099_v17, %v1099_v17  ;;  %v1402_v20 = vpop.f32.mrb[25].mxu0 }
 0x957   : > { %v1102_v21 = vpop.f32.mrb[26].mxu0 }
 0x958   : > { %v1403_v23 = vpop.f32.mrb[27].mxu0  ;;  %1407 = vmatmul.mubr.msk.bf16.vlgmr.msra.gmra.mrb[24].mxu1 %vm516_vm2, %v1105_v19 }
 0xa2b   : > { %v1147_v24 = vpop.f32.mrb[24].mxu1 }
 0xa2c   : > { %v1153_v26 = vadd.f32 %v1147_v24, %v993_v8  ;;  %v1408_v27 = vpop.f32.mrb[25].mxu1 }
 0xa2d   : > { %v1150_v28 = vpop.f32.mrb[26].mxu1 }
 0xa2e   : > { %v1161_v29 = vadd.f32 %v1287_v25, %v1153_v26  ;;  %v1409_v30 = vpop.f32.mrb[27].mxu1 }
 0xa30   : > { %v1162_v31 = vadd.f32 %v1161_v29, %v1560_v7  ;;  %v1288_v7 = vld [vmem:[%s1698_s8] ss:$0 sm:$0xff] }
 0xa32   : > { %v1163_v32 = vsel %vm399_vm1, %v1162_v31, 0.0 }
 0xa33   : > { %1164 = vadd.xlane.f32.xlu1 %v1163_v32 }
 0xac0   : > { %v1165_v33 = vpop.xlane.xlu1 %1164 }
 0xac1   : > { %v1167_v34 = vmul.f32 0.03125, %v1165_v33 }
 0xac3   : > { %v1168_v35 = vsub.f32 %v1162_v31, %v1167_v34 }
 0xac5   : > { %v1169_v36 = vmul.f32 %v1168_v35, %v1168_v35 }
 0xac7   : > { %v1170_v37 = vsel %vm399_vm1, %v1169_v36, 0.0 }
 0xac8   : > { %1171 = vadd.xlane.f32.xlu0 %v1170_v37 }
 0xb55   : > { %v1172_v38 = vpop.xlane.xlu0 %1171 }
 0xb56   : > { %v1173_v39 = vmul.f32 0.03125, %v1172_v38 }
 0xb58   : > { %v1174_v40 = vadd.f32 1e-05, %v1173_v39 }
 0xb5a   : > { %1447 = vrsqrt.f32 %v1174_v40 }
 0xb64   : > { %v1448_v41 = vpop.eup %1447 }
 0xb65   : > { %v1176_v42 = vmul.f32 %v1448_v41, %v1168_v35 }
 0xb67   : > { %v1184_v44 = vmul.f32 %v1288_v7, %v1176_v42 }
 0xb69   : > { %v1192_v45 = vadd.f32 %v1289_v43, %v1184_v44 }
 0xb6b   : > { %1193 = vst.msk [vmem:[%s371_s20] sm:$0xff] %vm399_vm1, %v1192_v45 }
 0xb6c PF: > { %s20_s13 = sadd.s32 1, %s1455_s13  }
 0xb6d   : > { %p17_p4 = scmp.ge.s32.totalorder %s20_s13, 4  }
 0xb6f   :  { %19 = sbr.rel (!%p17_p4) target bundleno = 1 (0x1), region = 93 }

// kernel: _lambda_.13
= control target key start
LH: loop header
LB: loop body
LE: loop exit
PB: predicated region body
PF: predicated region fallthrough
CT: control target
= control target key end

     0   :  { %v377_v1 = vmov 0.0   ;;  %vm378_vm0 = vmmov 0   ;;  %vm54_vm1 = vcmask 261120   ;;  %s489_s0 = inlined_call_operand.vmem [shape: f32[16,32], index: 0, kind: input, shape index: {}]   ;;  %s490_s1 = inlined_call_operand.vmem [shape: bf16[32,128], index: 1, kind: input, shape index: {}]   ;;  %s491_s2 = inlined_call_operand.vmem [shape: f32[1,128], index: 2, kind: input, shape index: {}]   ;;  %s492_s3 = inlined_call_operand.vmem [shape: bf16[128,32], index: 3, kind: input, shape index: {}]   ;;  %s493_s4 = inlined_call_operand.vmem [shape: f32[1,32], index: 4, kind: input, shape index: {}]   ;;  %s494_s5 = inlined_call_operand.vmem [shape: f32[1,32], index: 5, kind: input, shape index: {}]   ;;  %s495_s6 = inlined_call_operand.vmem [shape: f32[1,32], index: 6, kind: input, shape index: {}]   ;;  %s496_s7 = inlined_call_operand.hbm [shape: f32[16,32], index: 7, kind: output, shape index: {}]  }
   0x1   :  { %v339_v0 = vld [vmem:[%s490_s1] sm:$0xff]   ;;  %306 = vmatprep.subr.bf16.mxu0 %v377_v1  ;;  %v340_v2 = vld [vmem:[%s490_s1 + $0x8] sm:$0xff]   ;;  %314 = vmatprep.subr.bf16.mxu1 %v377_v1  ;;  %v343_v8 = vld [vmem:[%s492_s3 + $0x10] sm:$0xff]  }
   0x2   :  { %307 = vmatpush3.bf16.msra.mxu0 %v339_v0  ;;  %310 = vmatprep.mubr.msk.bf16.mxu0 %vm378_vm0, %v377_v1  ;;  %v28_v3 = vld [vmem:[%s489_s0] sm:$0xff]  ;;  %v29_v4 = vld [vmem:[%s489_s0 + $0x8] sm:$0xff] }
   0x3   :  { %308 = vmatprep.subr.bf16.mxu0 %v377_v1  ;;  %v341_v5 = vld [vmem:[%s492_s3] sm:$0xff]   ;;  %330 = vmatprep.mubr.msk.bf16.mxu1 %vm378_vm0, %v377_v1  ;;  %v30_v6 = vpack.c.bf16 %v29_v4, %v28_v3  ;;  %v342_v7 = vld [vmem:[%s492_s3 + $0x8] sm:$0xff]  }
   0x4   :  { %315 = vmatpush3.bf16.msra.mxu1 %v341_v5 }
   0x5   :  { %316 = vmatprep.subr.bf16.mxu1 %v377_v1 }
   0x6   :  { %309 = vmatpush3.bf16.msra.mxu0 %v340_v2 }
   0x8   :  { %317 = vmatpush3.bf16.msra.mxu1 %v342_v7 }
   0x9   :  { %311 = vmatmul.mubr.msk.bf16.vlgmr.msra.gmra.mrb[0].mxu0 %vm54_vm1, %v30_v6  ;;  %318 = vmatprep.subr.bf16.mxu1 %v377_v1 }
   0xa   :  { %12 = vsyncpa [#allocation3], 0  ;;  %v344_v9 = vld [vmem:[%s492_s3 + $0x18] sm:$0xff]   ;;  %v345_v10 = vld [vmem:[%s492_s3 + $0x20] sm:$0xff]   ;;  %s379_s28 = smov [#allocation2]  }
   0xb   :  { %v346_v11 = vld [vmem:[%s492_s3 + $0x28] sm:$0xff]   ;;  %v347_v12 = vld [vmem:[%s492_s3 + $0x30] sm:$0xff]   ;;  %v348_v13 = vld [vmem:[%s492_s3 + $0x38] sm:$0xff]   ;;  %s268_s29 = sshll.u32 %s379_s28, 4  ;;  %s269_s29 = int_to_ptr.vmem [resolvable:$true] %s268_s29 }
   0xc   :  { %319 = vmatpush3.bf16.msra.mxu1 %v343_v8  ;;  %v279_v14 = vld [vmem:[%s491_s2] ss:$0 sm:$0xff]  ;;  %s353_s30 = scalar_lea.vmem %s269_s29, 256  ;;  %p358_p1 = scmp.lt.s32.totalorder %s269_s29, %s269_s29 }
   0xd   :  { %320 = vmatprep.subr.bf16.mxu1 %v377_v1  ;;  %v283_v24 = vld [vmem:[%s493_s4] ss:$0 sm:$0xff]  ;;  %p354_p0 = scmp.ne.s32.totalorder %s269_s29, %s353_s30  ;;  %p359_p2 = scmp.lt.s32.totalorder %s353_s30, %s353_s30 }
   0xe   :  { %v292_v52 = vld [vmem:[%s494_s5] ss:$0 sm:$0xff] }
   0xf   :  { %v293_v54 = vld [vmem:[%s495_s6] ss:$0 sm:$0xff]  ;;  %p360_p3 = por %p359_p2, %p358_p1 }
  0x10   :  { %321 = vmatpush3.bf16.msra.mxu1 %v344_v9 }
  0x11   :  { %322 = vmatprep.subr.bf16.mxu1 %v377_v1  ;;  %p361_p4 = pnand %p360_p3, %p354_p0 }
  0x14   :  { %323 = vmatpush3.bf16.msra.mxu1 %v345_v10 }
  0x15   :  { %324 = vmatprep.subr.bf16.mxu1 %v377_v1 }
  0x18   :  { %325 = vmatpush3.bf16.msra.mxu1 %v346_v11 }
  0x19   :  { %326 = vmatprep.subr.bf16.mxu1 %v377_v1 }
  0x1c   :  { %327 = vmatpush3.bf16.msra.mxu1 %v347_v12 }
  0x1d   :  { %328 = vmatprep.subr.bf16.mxu1 %v377_v1 }
  0x20   :  { %329 = vmatpush3.bf16.msra.mxu1 %v348_v13 }
  0xdc   :  { %v92_v15 = vpop.f32.mrb[0].mxu0 }
  0xdd   :  { %v93_v16 = vadd.f32 %v279_v14, %v92_v15  ;;  %v312_v17 = vpop.f32.mrb[1].mxu0 }
  0xde   :  { %v95_v18 = vpop.f32.mrb[2].mxu0 }
  0xdf   :  { %v96_v19 = vadd.f32 %v279_v14, %v95_v18  ;;  %v313_v20 = vpop.f32.mrb[3].mxu0  ;;  %v99_v21 = vmax.f32 %v93_v16, 0.0 }
  0xe1   :  { %v100_v22 = vmax.f32 %v96_v19, 0.0 }
  0xe3   :  { %v101_v23 = vpack.c.bf16 %v100_v22, %v99_v21 }
  0xe5   :  { %331 = vmatmul.mubr.bf16.vlgmr.msra.gmra.mrb[0].mxu1 %v101_v23 }
 0x1b8   :  { %v207_v25 = vpop.f32.mrb[0].mxu1 }
 0x1b9   :  { %v208_v26 = vadd.f32 %v283_v24, %v207_v25  ;;  %v332_v27 = vpop.f32.mrb[1].mxu1 }
 0x1ba   :  { %v210_v28 = vpop.f32.mrb[2].mxu1 }
 0x1bb   :  { %v211_v29 = vadd.f32 %v283_v24, %v210_v28  ;;  %v333_v30 = vpop.f32.mrb[3].mxu1  ;;  %v214_v31 = vadd.f32 %v208_v26, %v28_v3 }
 0x1bd   :  { %v216_v32 = vsel %vm54_vm1, %v214_v31, 0.0  ;;  %v215_v33 = vadd.f32 %v211_v29, %v29_v4 }
 0x1be   :  { %217 = vadd.xlane.f32.xlu0 %v216_v32 }
 0x1bf   :  { %v219_v34 = vsel %vm54_vm1, %v215_v33, 0.0 }
 0x1c2   :  { %220 = vadd.xlane.f32.xlu0 %v219_v34 }
 0x24b   :  { %v218_v35 = vpop.xlane.xlu0 %217 }
 0x24c   :  { %v223_v36 = vmul.f32 0.03125, %v218_v35 }
 0x24e   :  { %v225_v37 = vsub.f32 %v214_v31, %v223_v36 }
 0x24f   :  { %v221_v38 = vpop.xlane.xlu0 %220 }
 0x250   :  { %v224_v39 = vmul.f32 0.03125, %v221_v38  ;;  %v227_v40 = vmul.f32 %v225_v37, %v225_v37 }
 0x252   :  { %v226_v41 = vsub.f32 %v215_v33, %v224_v39  ;;  %v229_v42 = vsel %vm54_vm1, %v227_v40, 0.0 }
 0x253   :  { %230 = vadd.xlane.f32.xlu1 %v229_v42 }
 0x254   :  { %v228_v43 = vmul.f32 %v226_v41, %v226_v41 }
 0x256   :  { %v232_v44 = vsel %vm54_vm1, %v228_v43, 0.0 }
 0x257   :  { %233 = vadd.xlane.f32.xlu1 %v232_v44 }
 0x2e0   :  { %v231_v45 = vpop.xlane.xlu1 %230 }
 0x2e1   :  { %v235_v46 = vmul.f32 0.03125, %v231_v45 }
 0x2e3   :  { %v237_v47 = vadd.f32 1e-05, %v235_v46 }
 0x2e4   :  { %v234_v48 = vpop.xlane.xlu1 %233 }
 0x2e5   :  { %349 = vrsqrt.f32 %v237_v47  ;;  %v236_v49 = vmul.f32 0.03125, %v234_v48 }
 0x2e7   :  { %v238_v50 = vadd.f32 1e-05, %v236_v49 }
 0x2e9   :  { %351 = vrsqrt.f32 %v238_v50 }
 0x2ef   :  { %v350_v51 = vpop.eup %349 }
 0x2f0   :  { %v241_v53 = vmul.f32 %v350_v51, %v225_v37 }
 0x2f2   :  { %v250_v55 = vmul.f32 %v292_v52, %v241_v53 }
 0x2f3   :  { %v352_v56 = vpop.eup %351 }
 0x2f4   :  { %v242_v57 = vmul.f32 %v352_v56, %v226_v41  ;;  %v259_v58 = vadd.f32 %v293_v54, %v250_v55 }
 0x2f6   :  { %v251_v59 = vmul.f32 %v292_v52, %v242_v57  ;;  %261 = vst.msk [vmem:[#allocation2] sm:$0xff] %vm54_vm1, %v259_v58 }
 0x2f8   :  { %v260_v60 = vadd.f32 %v293_v54, %v251_v59 }
 0x2fa   :  { %262 = vst.msk [vmem:[#allocation2 + $0x8] sm:$0xff] %vm54_vm1, %v260_v60 }
 0x2fb   :  { %364 = shalt.err (!%p361_p4)
}
 0x2fc   :  { %s365_s8 = scalar_lea.hbm %s496_s7, 256 }
 0x2fd   :  { %p366_p5 = scmp.ne.s32.totalorder %s496_s7, %s365_s8  ;;  %p369_p6 = scmp.lt.u32.totalorder %s365_s8, %s496_s7 }
 0x2ff   :  { %p371_p7 = pnand %p369_p6, %p366_p5 }
 0x301   :  { %374 = shalt.err (!%p371_p7)
}
 0x302   :  { %s380_s12 = smov 128   ;;  %s381_s13 = smov 8  }
 0x303   :  { %274 = dma.vmem_to_hbm [thread:$0]  %s269_s29, 256, %s496_s7, [#allocation3], %s380_s12, %s380_s12, %s381_s13  }
 0x304   :  { %375 = dma.done.wait [#allocation3], 256  }
 0x305   :  { %376 = vsyncadd [#allocation3], 4294967040 }
 0x306   :  { %278 = vsyncpa [#allocation3], 1 }

</bundles_post_ra>
